<compile_context>
chip_gen: v6e
topology: v6e:2x2x1
jax: 0.10.0
libtpu: 0.0.40
codegen_flags: <defaults>
</compile_context>

<pallas_src>
import jax
import jax.numpy as jnp
from jax.experimental import pallas as pl
from jax.experimental.pallas import tpu as pltpu


_VMEM_LIMIT = 32 * 1024 * 1024  # safe on v5e/v6e/v7x; per-step tiles are far smaller.


# ---------------- helpers ----------------

def _round_up(x, k):
    return ((x + k - 1) // k) * k


def _tile_rows(m, tile):
    """Pick (padded_rows, row_block).

    Row block is a multiple of 16 (bf16 sublane packing) and, when the row
    count allows, the grid has at least 2 blocks so the "parallel" axis can
    shard across v7x's two TensorCores.
    """
    if m <= 32:
        mp = _round_up(m, 16)
        return mp, mp
    bm = min(tile, _round_up((m + 1) // 2, 16))
    mp = _round_up(m, bm)
    return mp, bm


# ---------------- Pallas kernels ----------------

def _conv_pool_kernel(p_ref, w_ref, b_ref, o_ref):
    """Fused conv-as-matmul + 2x2 maxpool + bias + ReLU.

    p_ref: (4, bm, k) bf16 -- one patch matrix per pool member.
    Max is taken over the raw f32 accumulators; bias + ReLU applied once
    (mathematically identical: bias is a constant shift, ReLU monotone).
    """
    w = w_ref[...]
    acc = jnp.dot(p_ref[0], w, preferred_element_type=jnp.float32)
    for a in range(1, 4):
        acc = jnp.maximum(
            acc, jnp.dot(p_ref[a], w, preferred_element_type=jnp.float32))
    o_ref[...] = jnp.maximum(acc + b_ref[...], 0.0).astype(o_ref.dtype)


def _fc_kernel(x_ref, w3_ref, b3_ref, w4_ref, b4_ref, o_ref):
    """Fused Linear(1600,128) + ReLU + Linear(128,10) + bias."""
    h = jnp.dot(x_ref[...], w3_ref[...], preferred_element_type=jnp.float32)
    h = jnp.maximum(h + b3_ref[...], 0.0)
    y = jnp.dot(h.astype(w4_ref.dtype), w4_ref[...],
                preferred_element_type=jnp.float32)
    o_ref[...] = (y + b4_ref[...]).astype(o_ref.dtype)


# ---------------- stage wrappers ----------------

def conv_relu_pool(x_nhwc, w_mat, b_row, *, ksize=3, row_tile=1024):
    """3x3 valid conv + bias + ReLU + 2x2 maxpool (floor), fused in one kernel.

    x_nhwc: (N, H, W, C) f32/bf16.  w_mat: (C*kh*kw, OC) bf16 (PyTorch col
    order).  b_row: (1, OC) f32.  Returns (N, PH, PW, OC) bf16.
    """
    n, h, w, c = x_nhwc.shape
    ho, wo = h - ksize + 1, w - ksize + 1
    ph, pw = ho // 2, wo // 2
    k = c * ksize * ksize
    oc = w_mat.shape[1]
    m = n * ph * pw

    # Build 4 patch matrices, one per 2x2 pool member (a, bb).  Column order
    # is (c, kh, kw) to match PyTorch weight.reshape(oc, -1).
    parts = []
    for a in (0, 1):
        for bb in (0, 1):
            cols = [x_nhwc[:, a + di: a + di + 2 * ph: 2,
                           bb + dj: bb + dj + 2 * pw: 2, :]
                    for di in range(ksize) for dj in range(ksize)]
            parts.append(jnp.stack(cols, axis=-1).reshape(m, k))
    patches = jnp.stack(parts, axis=0).astype(jnp.bfloat16)      # (4, m, k)

    mp, bm = _tile_rows(m, row_tile)
    if mp != m:
        patches = jnp.pad(patches, ((0, 0), (0, mp - m), (0, 0)))

    out = pl.pallas_call(
        _conv_pool_kernel,
        out_shape=jax.ShapeDtypeStruct((mp, oc), jnp.bfloat16),
        grid=(mp // bm,),
        in_specs=[pl.BlockSpec((4, bm, k), lambda i: (0, i, 0)),
                  pl.BlockSpec((k, oc), lambda i: (0, 0)),
                  pl.BlockSpec((1, oc), lambda i: (0, 0))],
        out_specs=pl.BlockSpec((bm, oc), lambda i: (i, 0)),
        compiler_params=pltpu.CompilerParams(
            dimension_semantics=("parallel",),
            vmem_limit_bytes=_VMEM_LIMIT),
        cost_estimate=pl.CostEstimate(
            flops=2 * 4 * mp * k * oc,
            transcendentals=0,
            bytes_accessed=4 * mp * k * 2 + k * oc * 2 + oc * 4 + mp * oc * 2),
    )(patches, w_mat, b_row)

    return out[:m].reshape(n, ph, pw, oc)


def fc_head(x, w3, b3, w4, b4, *, row_tile=1024):
    """Fused Linear+ReLU+Linear. x: (N, 1600) bf16, weights pre-laid-out."""
    m, k1 = x.shape
    nh = w3.shape[1]
    no = w4.shape[1]

    mp, bm = _tile_rows(m, row_tile)
    xp = x.astype(jnp.bfloat16)
    if mp != m:
        xp = jnp.pad(xp, ((0, mp - m), (0, 0)))

    out = pl.pallas_call(
        _fc_kernel,
        out_shape=jax.ShapeDtypeStruct((mp, no), jnp.float32),
        grid=(mp // bm,),
        in_specs=[pl.BlockSpec((bm, k1), lambda i: (i, 0)),
                  pl.BlockSpec((k1, nh), lambda i: (0, 0)),
                  pl.BlockSpec((1, nh), lambda i: (0, 0)),
                  pl.BlockSpec((nh, no), lambda i: (0, 0)),
                  pl.BlockSpec((1, no), lambda i: (0, 0))],
        out_specs=pl.BlockSpec((bm, no), lambda i: (i, 0)),
        compiler_params=pltpu.CompilerParams(
            dimension_semantics=("parallel",),
            vmem_limit_bytes=_VMEM_LIMIT),
        cost_estimate=pl.CostEstimate(
            flops=2 * mp * (k1 * nh + nh * no),
            transcendentals=0,
            bytes_accessed=mp * k1 * 2 + k1 * nh * 2 + nh * no * 2
                           + (nh + no) * 4 + mp * no * 4),
    )(xp, w3, b3, w4, b4)

    return out[:m]


# ---------------- parameter layout (hoisted, done once) ----------------

def prepare_params(p):
    """Pre-reshape/transpose all weights once (PyTorch layouts -> kernel layouts)."""
    w1 = p["w1"].reshape(32, 1 * 9).T.astype(jnp.bfloat16)         # (9, 32)
    w2 = p["w2"].reshape(64, 32 * 9).T.astype(jnp.bfloat16)        # (288, 64)
    # Linear1: PyTorch (128, 1600) with input flattened in (C,H,W) order.
    # Permute the input dim to (H,W,C) so the NHWC activation flattens directly.
    w3 = (p["w3"].reshape(128, 64, 5, 5)
          .transpose(2, 3, 1, 0)                                    # (H,W,C,out)
          .reshape(5 * 5 * 64, 128).astype(jnp.bfloat16))           # (1600, 128)
    w4 = p["w4"].T.astype(jnp.bfloat16)                             # (128, 10)
    return {
        "w1": w1, "b1": p["b1"].reshape(1, 32).astype(jnp.float32),
        "w2": w2, "b2": p["b2"].reshape(1, 64).astype(jnp.float32),
        "w3": w3, "b3": p["b3"].reshape(1, 128).astype(jnp.float32),
        "w4": w4, "b4": p["b4"].reshape(1, 10).astype(jnp.float32),
    }


# ---------------- full forward ----------------

def simple_cnn_forward(x_nchw, pp):
    n = x_nchw.shape[0]
    x = jnp.transpose(x_nchw, (0, 2, 3, 1)).astype(jnp.float32)     # NHWC (N,28,28,1)
    x = conv_relu_pool(x, pp["w1"], pp["b1"])                       # (N,13,13,32) bf16
    x = conv_relu_pool(x, pp["w2"], pp["b2"])                       # (N, 5, 5,64) bf16
    x = x.reshape(n, 5 * 5 * 64)                                    # (N,1600), (H,W,C) order
    return fc_head(x, pp["w3"], pp["b3"], pp["w4"], pp["b4"])       # (N,10) f32


# ---------------- pure-JAX reference (PyTorch semantics, f32) ----------------

def reference_forward(x_nchw, p):
    x = jnp.transpose(x_nchw, (0, 2, 3, 1)).astype(jnp.float32)     # NHWC

    def conv(x, w, b):
        wt = jnp.transpose(w, (2, 3, 1, 0))                         # HWIO
        y = jax.lax.conv_general_dilated(
            x, wt, window_strides=(1, 1), padding="VALID",
            dimension_numbers=("NHWC", "HWIO", "NHWC"))
        return jax.nn.relu(y + b.reshape(1, 1, 1, -1))

    def pool(x):
        return jax.lax.reduce_window(x, -jnp.inf, jax.lax.max,
                                     (1, 2, 2, 1), (1, 2, 2, 1), "VALID")

    x = pool(conv(x, p["w1"], p["b1"]))
    x = pool(conv(x, p["w2"], p["b2"]))
    x = jnp.transpose(x, (0, 3, 1, 2)).reshape(x.shape[0], -1)      # (C,H,W) flatten
    h = jax.nn.relu(x @ p["w3"].T + p["b3"])
    return h @ p["w4"].T + p["b4"]


def init_params(key):
    """PyTorch-default-style init (uniform +/- 1/sqrt(fan_in)), f32."""
    ks = jax.random.split(key, 8)

    def u(k, shape, fan_in):
        bound = 1.0 / float(fan_in) ** 0.5
        return jax.random.uniform(k, shape, jnp.float32, -bound, bound)

    return {
        "w1": u(ks[0], (32, 1, 3, 3), 1 * 9),
        "b1": u(ks[1], (32,), 1 * 9),
        "w2": u(ks[2], (64, 32, 3, 3), 32 * 9),
        "b2": u(ks[3], (64,), 32 * 9),
        "w3": u(ks[4], (128, 64 * 5 * 5), 64 * 5 * 5),   # PyTorch Linear: (out, in)
        "b3": u(ks[5], (128,), 64 * 5 * 5),
        "w4": u(ks[6], (10, 128), 128),
        "b4": u(ks[7], (10,), 128),
    }


if __name__ == "__main__":
    key = jax.random.PRNGKey(0)
    pkey, xkey = jax.random.split(key)
    params = init_params(pkey)
    pp = prepare_params(params)           # weight layout transforms hoisted here
    # Small batch; spatial must be 28x28 to be consistent with the fc head.
    x = jax.random.normal(xkey, (2, 1, 28, 28), jnp.float32)

    out = jax.jit(simple_cnn_forward)(x, pp)
    out = jax.block_until_ready(out)
    assert out.shape == (2, 10) and out.dtype == jnp.float32
    assert bool(jnp.all(jnp.isfinite(out)))

    # Sanity check against the f32 PyTorch-semantics reference (bf16 operands
    # in the kernels -> loose tolerance).
    ref = jax.jit(reference_forward)(x, params)
    ref = jax.block_until_ready(ref)
    max_err = float(jnp.max(jnp.abs(out - ref)))
    assert max_err < 0.25, max_err

    print("KERNEL_OK")
</pallas_src>

<mosaic_0001>
module attributes {stable_mosaic.version = 11 : i64} {
  func.func @_conv_pool_kernel(%arg0: i32, %arg1: memref<4x176x9xbf16, #tpu.memory_space<vmem>>, %arg2: memref<9x32xbf16, #tpu.memory_space<vmem>>, %arg3: memref<1x32xf32, #tpu.memory_space<vmem>>, %arg4: memref<176x32xbf16, #tpu.memory_space<vmem>>) attributes {dimension_semantics = [#tpu.dimension_semantics<parallel>], iteration_bounds = array<i64: 2>, scalar_prefetch = 0 : i64, scratch_operands = 0 : i64, tpu.core_type = #tpu.core_type<tc>, window_params = [{transform_indices = @transform_0, window_bounds = array<i64: 4, 176, 9>}, {pipeline_mode = #tpu.pipeline_mode<synchronous>, transform_indices = @transform_1, window_bounds = array<i64: 9, 32>}, {pipeline_mode = #tpu.pipeline_mode<synchronous>, transform_indices = @transform_2, window_bounds = array<i64: 1, 32>}, {transform_indices = @transform_3, window_bounds = array<i64: 176, 32>}]} {
    %c0 = arith.constant 0 : index
    %c0_0 = arith.constant 0 : index
    %0 = vector.load %arg2[%c0, %c0_0] : memref<9x32xbf16, #tpu.memory_space<vmem>>, vector<9x32xbf16>
    %c0_1 = arith.constant 0 : index
    %c0_2 = arith.constant 0 : index
    %c0_3 = arith.constant 0 : index
    %1 = vector.load %arg1[%c0_1, %c0_2, %c0_3] : memref<4x176x9xbf16, #tpu.memory_space<vmem>>, vector<1x176x9xbf16>
    %2 = vector.shape_cast %1 : vector<1x176x9xbf16> to vector<176x9xbf16>
    %cst = arith.constant dense<0.000000e+00> : vector<176x32xf32>
    %3 = tpu.matmul %2, %0, %cst {dimension_numbers = #tpu.dot_dimension_numbers<[1], [0], [0], [1], [0, 0, 1, 1], [], []>} : vector<176x9xbf16>, vector<9x32xbf16>, vector<176x32xf32> -> vector<176x32xf32>
    %c1 = arith.constant 1 : index
    %c0_4 = arith.constant 0 : index
    %c0_5 = arith.constant 0 : index
    %4 = vector.load %arg1[%c1, %c0_4, %c0_5] : memref<4x176x9xbf16, #tpu.memory_space<vmem>>, vector<1x176x9xbf16>
    %5 = vector.shape_cast %4 : vector<1x176x9xbf16> to vector<176x9xbf16>
    %cst_6 = arith.constant dense<0.000000e+00> : vector<176x32xf32>
    %6 = tpu.matmul %5, %0, %cst_6 {dimension_numbers = #tpu.dot_dimension_numbers<[1], [0], [0], [1], [0, 0, 1, 1], [], []>} : vector<176x9xbf16>, vector<9x32xbf16>, vector<176x32xf32> -> vector<176x32xf32>
    %7 = arith.maximumf %3, %6 : vector<176x32xf32>
    %c2 = arith.constant 2 : index
    %c0_7 = arith.constant 0 : index
    %c0_8 = arith.constant 0 : index
    %8 = vector.load %arg1[%c2, %c0_7, %c0_8] : memref<4x176x9xbf16, #tpu.memory_space<vmem>>, vector<1x176x9xbf16>
    %9 = vector.shape_cast %8 : vector<1x176x9xbf16> to vector<176x9xbf16>
    %cst_9 = arith.constant dense<0.000000e+00> : vector<176x32xf32>
    %10 = tpu.matmul %9, %0, %cst_9 {dimension_numbers = #tpu.dot_dimension_numbers<[1], [0], [0], [1], [0, 0, 1, 1], [], []>} : vector<176x9xbf16>, vector<9x32xbf16>, vector<176x32xf32> -> vector<176x32xf32>
    %11 = arith.maximumf %7, %10 : vector<176x32xf32>
    %c3 = arith.constant 3 : index
    %c0_10 = arith.constant 0 : index
    %c0_11 = arith.constant 0 : index
    %12 = vector.load %arg1[%c3, %c0_10, %c0_11] : memref<4x176x9xbf16, #tpu.memory_space<vmem>>, vector<1x176x9xbf16>
    %13 = vector.shape_cast %12 : vector<1x176x9xbf16> to vector<176x9xbf16>
    %cst_12 = arith.constant dense<0.000000e+00> : vector<176x32xf32>
    %14 = tpu.matmul %13, %0, %cst_12 {dimension_numbers = #tpu.dot_dimension_numbers<[1], [0], [0], [1], [0, 0, 1, 1], [], []>} : vector<176x9xbf16>, vector<9x32xbf16>, vector<176x32xf32> -> vector<176x32xf32>
    %15 = arith.maximumf %11, %14 : vector<176x32xf32>
    %c0_13 = arith.constant 0 : index
    %c0_14 = arith.constant 0 : index
    %16 = vector.load %arg3[%c0_13, %c0_14] : memref<1x32xf32, #tpu.memory_space<vmem>>, vector<1x32xf32>
    %17 = vector.broadcast %16 : vector<1x32xf32> to vector<176x32xf32>
    %18 = arith.addf %15, %17 : vector<176x32xf32>
    %cst_15 = arith.constant 0.000000e+00 : f32
    %19 = vector.broadcast %cst_15 : f32 to vector<176x32xf32>
    %20 = arith.maximumf %18, %19 : vector<176x32xf32>
    %21 = arith.truncf %20 : vector<176x32xf32> to vector<176x32xbf16>
    %c0_16 = arith.constant 0 : index
    %c0_17 = arith.constant 0 : index
    %22 = vector.load %arg4[%c0_16, %c0_17] : memref<176x32xbf16, #tpu.memory_space<vmem>>, vector<176x32xbf16>
    tpu.vector_store %arg4[%c0_16, %c0_17], %21 {strides = array<i32>} : memref<176x32xbf16, #tpu.memory_space<vmem>>, vector<176x32xbf16>,
    return
  }
  func.func @transform_0(%arg0: i32) -> (i32, i32, i32) {
    %c0_i32 = arith.constant 0 : i32
    %c0_i32_0 = arith.constant 0 : i32
    %c0_i32_1 = arith.constant 0 : i32
    return %c0_i32, %arg0, %c0_i32_0 : i32, i32, i32
  }
  func.func @transform_1(%arg0: i32) -> (i32, i32) {
    %c0_i32 = arith.constant 0 : i32
    %c0_i32_0 = arith.constant 0 : i32
    %c0_i32_1 = arith.constant 0 : i32
    return %c0_i32, %c0_i32_0 : i32, i32
  }
  func.func @transform_2(%arg0: i32) -> (i32, i32) {
    %c0_i32 = arith.constant 0 : i32
    %c0_i32_0 = arith.constant 0 : i32
    %c0_i32_1 = arith.constant 0 : i32
    return %c0_i32, %c0_i32_0 : i32, i32
  }
  func.func @transform_3(%arg0: i32) -> (i32, i32) {
    %c0_i32 = arith.constant 0 : i32
    %c0_i32_0 = arith.constant 0 : i32
    return %arg0, %c0_i32 : i32, i32
  }
}

module attributes {stable_mosaic.version = 11 : i64} {
  func.func @_conv_pool_kernel(%arg0: i32, %arg1: memref<4x32x288xbf16, #tpu.memory_space<vmem>>, %arg2: memref<288x64xbf16, #tpu.memory_space<vmem>>, %arg3: memref<1x64xf32, #tpu.memory_space<vmem>>, %arg4: memref<32x64xbf16, #tpu.memory_space<vmem>>) attributes {dimension_semantics = [#tpu.dimension_semantics<parallel>], iteration_bounds = array<i64: 2>, scalar_prefetch = 0 : i64, scratch_operands = 0 : i64, tpu.core_type = #tpu.core_type<tc>, window_params = [{transform_indices = @transform_0, window_bounds = array<i64: 4, 32, 288>}, {pipeline_mode = #tpu.pipeline_mode<synchronous>, transform_indices = @transform_1, window_bounds = array<i64: 288, 64>}, {pipeline_mode = #tpu.pipeline_mode<synchronous>, transform_indices = @transform_2, window_bounds = array<i64: 1, 64>}, {transform_indices = @transform_3, window_bounds = array<i64: 32, 64>}]} {
    %c0 = arith.constant 0 : index
    %c0_0 = arith.constant 0 : index
    %0 = vector.load %arg2[%c0, %c0_0] : memref<288x64xbf16, #tpu.memory_space<vmem>>, vector<288x64xbf16>
    %c0_1 = arith.constant 0 : index
    %c0_2 = arith.constant 0 : index
    %c0_3 = arith.constant 0 : index
    %1 = vector.load %arg1[%c0_1, %c0_2, %c0_3] : memref<4x32x288xbf16, #tpu.memory_space<vmem>>, vector<1x32x288xbf16>
    %2 = vector.shape_cast %1 : vector<1x32x288xbf16> to vector<32x288xbf16>
    %cst = arith.constant dense<0.000000e+00> : vector<32x64xf32>
    %3 = tpu.matmul %2, %0, %cst {dimension_numbers = #tpu.dot_dimension_numbers<[1], [0], [0], [1], [0, 0, 1, 1], [], []>} : vector<32x288xbf16>, vector<288x64xbf16>, vector<32x64xf32> -> vector<32x64xf32>
    %c1 = arith.constant 1 : index
    %c0_4 = arith.constant 0 : index
    %c0_5 = arith.constant 0 : index
    %4 = vector.load %arg1[%c1, %c0_4, %c0_5] : memref<4x32x288xbf16, #tpu.memory_space<vmem>>, vector<1x32x288xbf16>
    %5 = vector.shape_cast %4 : vector<1x32x288xbf16> to vector<32x288xbf16>
    %cst_6 = arith.constant dense<0.000000e+00> : vector<32x64xf32>
    %6 = tpu.matmul %5, %0, %cst_6 {dimension_numbers = #tpu.dot_dimension_numbers<[1], [0], [0], [1], [0, 0, 1, 1], [], []>} : vector<32x288xbf16>, vector<288x64xbf16>, vector<32x64xf32> -> vector<32x64xf32>
    %7 = arith.maximumf %3, %6 : vector<32x64xf32>
    %c2 = arith.constant 2 : index
    %c0_7 = arith.constant 0 : index
    %c0_8 = arith.constant 0 : index
    %8 = vector.load %arg1[%c2, %c0_7, %c0_8] : memref<4x32x288xbf16, #tpu.memory_space<vmem>>, vector<1x32x288xbf16>
    %9 = vector.shape_cast %8 : vector<1x32x288xbf16> to vector<32x288xbf16>
    %cst_9 = arith.constant dense<0.000000e+00> : vector<32x64xf32>
    %10 = tpu.matmul %9, %0, %cst_9 {dimension_numbers = #tpu.dot_dimension_numbers<[1], [0], [0], [1], [0, 0, 1, 1], [], []>} : vector<32x288xbf16>, vector<288x64xbf16>, vector<32x64xf32> -> vector<32x64xf32>
    %11 = arith.maximumf %7, %10 : vector<32x64xf32>
    %c3 = arith.constant 3 : index
    %c0_10 = arith.constant 0 : index
    %c0_11 = arith.constant 0 : index
    %12 = vector.load %arg1[%c3, %c0_10, %c0_11] : memref<4x32x288xbf16, #tpu.memory_space<vmem>>, vector<1x32x288xbf16>
    %13 = vector.shape_cast %12 : vector<1x32x288xbf16> to vector<32x288xbf16>
    %cst_12 = arith.constant dense<0.000000e+00> : vector<32x64xf32>
    %14 = tpu.matmul %13, %0, %cst_12 {dimension_numbers = #tpu.dot_dimension_numbers<[1], [0], [0], [1], [0, 0, 1, 1], [], []>} : vector<32x288xbf16>, vector<288x64xbf16>, vector<32x64xf32> -> vector<32x64xf32>
    %15 = arith.maximumf %11, %14 : vector<32x64xf32>
    %c0_13 = arith.constant 0 : index
    %c0_14 = arith.constant 0 : index
    %16 = vector.load %arg3[%c0_13, %c0_14] : memref<1x64xf32, #tpu.memory_space<vmem>>, vector<1x64xf32>
    %17 = vector.broadcast %16 : vector<1x64xf32> to vector<32x64xf32>
    %18 = arith.addf %15, %17 : vector<32x64xf32>
    %cst_15 = arith.constant 0.000000e+00 : f32
    %19 = vector.broadcast %cst_15 : f32 to vector<32x64xf32>
    %20 = arith.maximumf %18, %19 : vector<32x64xf32>
    %21 = arith.truncf %20 : vector<32x64xf32> to vector<32x64xbf16>
    %c0_16 = arith.constant 0 : index
    %c0_17 = arith.constant 0 : index
    %22 = vector.load %arg4[%c0_16, %c0_17] : memref<32x64xbf16, #tpu.memory_space<vmem>>, vector<32x64xbf16>
    tpu.vector_store %arg4[%c0_16, %c0_17], %21 {strides = array<i32>} : memref<32x64xbf16, #tpu.memory_space<vmem>>, vector<32x64xbf16>,
    return
  }
  func.func @transform_0(%arg0: i32) -> (i32, i32, i32) {
    %c0_i32 = arith.constant 0 : i32
    %c0_i32_0 = arith.constant 0 : i32
    %c0_i32_1 = arith.constant 0 : i32
    return %c0_i32, %arg0, %c0_i32_0 : i32, i32, i32
  }
  func.func @transform_1(%arg0: i32) -> (i32, i32) {
    %c0_i32 = arith.constant 0 : i32
    %c0_i32_0 = arith.constant 0 : i32
    %c0_i32_1 = arith.constant 0 : i32
    return %c0_i32, %c0_i32_0 : i32, i32
  }
  func.func @transform_2(%arg0: i32) -> (i32, i32) {
    %c0_i32 = arith.constant 0 : i32
    %c0_i32_0 = arith.constant 0 : i32
    %c0_i32_1 = arith.constant 0 : i32
    return %c0_i32, %c0_i32_0 : i32, i32
  }
  func.func @transform_3(%arg0: i32) -> (i32, i32) {
    %c0_i32 = arith.constant 0 : i32
    %c0_i32_0 = arith.constant 0 : i32
    return %arg0, %c0_i32 : i32, i32
  }
}

module attributes {stable_mosaic.version = 11 : i64} {
  func.func @_fc_kernel(%arg0: i32, %arg1: memref<16x1600xbf16, #tpu.memory_space<vmem>>, %arg2: memref<1600x128xbf16, #tpu.memory_space<vmem>>, %arg3: memref<1x128xf32, #tpu.memory_space<vmem>>, %arg4: memref<128x10xbf16, #tpu.memory_space<vmem>>, %arg5: memref<1x10xf32, #tpu.memory_space<vmem>>, %arg6: memref<16x10xf32, #tpu.memory_space<vmem>>) attributes {dimension_semantics = [#tpu.dimension_semantics<parallel>], iteration_bounds = array<i64: 1>, scalar_prefetch = 0 : i64, scratch_operands = 0 : i64, tpu.core_type = #tpu.core_type<tc>, window_params = [{transform_indices = @transform_0, window_bounds = array<i64: 16, 1600>}, {pipeline_mode = #tpu.pipeline_mode<synchronous>, transform_indices = @transform_1, window_bounds = array<i64: 1600, 128>}, {pipeline_mode = #tpu.pipeline_mode<synchronous>, transform_indices = @transform_2, window_bounds = array<i64: 1, 128>}, {pipeline_mode = #tpu.pipeline_mode<synchronous>, transform_indices = @transform_3, window_bounds = array<i64: 128, 10>}, {pipeline_mode = #tpu.pipeline_mode<synchronous>, transform_indices = @transform_4, window_bounds = array<i64: 1, 10>}, {transform_indices = @transform_5, window_bounds = array<i64: 16, 10>}]} {
    %c0 = arith.constant 0 : index
    %c0_0 = arith.constant 0 : index
    %0 = vector.load %arg1[%c0, %c0_0] : memref<16x1600xbf16, #tpu.memory_space<vmem>>, vector<16x1600xbf16>
    %c0_1 = arith.constant 0 : index
    %c0_2 = arith.constant 0 : index
    %1 = vector.load %arg2[%c0_1, %c0_2] : memref<1600x128xbf16, #tpu.memory_space<vmem>>, vector<1600x128xbf16>
    %cst = arith.constant dense<0.000000e+00> : vector<16x128xf32>
    %2 = tpu.matmul %0, %1, %cst {dimension_numbers = #tpu.dot_dimension_numbers<[1], [0], [0], [1], [0, 0, 1, 1], [], []>} : vector<16x1600xbf16>, vector<1600x128xbf16>, vector<16x128xf32> -> vector<16x128xf32>
    %c0_3 = arith.constant 0 : index
    %c0_4 = arith.constant 0 : index
    %3 = vector.load %arg3[%c0_3, %c0_4] : memref<1x128xf32, #tpu.memory_space<vmem>>, vector<1x128xf32>
    %4 = vector.broadcast %3 : vector<1x128xf32> to vector<16x128xf32>
    %5 = arith.addf %2, %4 : vector<16x128xf32>
    %cst_5 = arith.constant 0.000000e+00 : f32
    %6 = vector.broadcast %cst_5 : f32 to vector<16x128xf32>
    %7 = arith.maximumf %5, %6 : vector<16x128xf32>
    %8 = arith.truncf %7 : vector<16x128xf32> to vector<16x128xbf16>
    %c0_6 = arith.constant 0 : index
    %c0_7 = arith.constant 0 : index
    %9 = vector.load %arg4[%c0_6, %c0_7] : memref<128x10xbf16, #tpu.memory_space<vmem>>, vector<128x10xbf16>
    %cst_8 = arith.constant dense<0.000000e+00> : vector<16x10xf32>
    %10 = tpu.matmul %8, %9, %cst_8 {dimension_numbers = #tpu.dot_dimension_numbers<[1], [0], [0], [1], [0, 0, 1, 1], [], []>} : vector<16x128xbf16>, vector<128x10xbf16>, vector<16x10xf32> -> vector<16x10xf32>
    %c0_9 = arith.constant 0 : index
    %c0_10 = arith.constant 0 : index
    %11 = vector.load %arg5[%c0_9, %c0_10] : memref<1x10xf32, #tpu.memory_space<vmem>>, vector<1x10xf32>
    %12 = vector.broadcast %11 : vector<1x10xf32> to vector<16x10xf32>
    %13 = arith.addf %10, %12 : vector<16x10xf32>
    %c0_11 = arith.constant 0 : index
    %c0_12 = arith.constant 0 : index
    %14 = vector.load %arg6[%c0_11, %c0_12] : memref<16x10xf32, #tpu.memory_space<vmem>>, vector<16x10xf32>
    tpu.vector_store %arg6[%c0_11, %c0_12], %13 {strides = array<i32>} : memref<16x10xf32, #tpu.memory_space<vmem>>, vector<16x10xf32>,
    return
  }
  func.func @transform_0(%arg0: i32) -> (i32, i32) {
    %c0_i32 = arith.constant 0 : i32
    %c0_i32_0 = arith.constant 0 : i32
    return %arg0, %c0_i32 : i32, i32
  }
  func.func @transform_1(%arg0: i32) -> (i32, i32) {
    %c0_i32 = arith.constant 0 : i32
    %c0_i32_0 = arith.constant 0 : i32
    %c0_i32_1 = arith.constant 0 : i32
    return %c0_i32, %c0_i32_0 : i32, i32
  }
  func.func @transform_2(%arg0: i32) -> (i32, i32) {
    %c0_i32 = arith.constant 0 : i32
    %c0_i32_0 = arith.constant 0 : i32
    %c0_i32_1 = arith.constant 0 : i32
    return %c0_i32, %c0_i32_0 : i32, i32
  }
  func.func @transform_3(%arg0: i32) -> (i32, i32) {
    %c0_i32 = arith.constant 0 : i32
    %c0_i32_0 = arith.constant 0 : i32
    %c0_i32_1 = arith.constant 0 : i32
    return %c0_i32, %c0_i32_0 : i32, i32
  }
  func.func @transform_4(%arg0: i32) -> (i32, i32) {
    %c0_i32 = arith.constant 0 : i32
    %c0_i32_0 = arith.constant 0 : i32
    %c0_i32_1 = arith.constant 0 : i32
    return %c0_i32, %c0_i32_0 : i32, i32
  }
  func.func @transform_5(%arg0: i32) -> (i32, i32) {
    %c0_i32 = arith.constant 0 : i32
    %c0_i32_0 = arith.constant 0 : i32
    return %arg0, %c0_i32 : i32, i32
  }
}

</mosaic_0001>

<bundles_post_ra>
// kernel: simple_cnn_forward.3
= control target key start
LH: loop header
LB: loop body
LE: loop exit
PB: predicated region body
PF: predicated region fallthrough
CT: control target
= control target key end

     0   :  { %s2361_s12 = smov 0   ;;  %s2363_s13 = smov 0   ;;  %s2961_s0 = inlined_call_operand.vmem [shape: bf16[4,352,9], index: 0, kind: input, shape index: {}]   ;;  %s2962_s1 = inlined_call_operand.vmem [shape: bf16[9,32], index: 1, kind: input, shape index: {}]   ;;  %s2963_s2 = inlined_call_operand.vmem [shape: f32[1,32], index: 2, kind: input, shape index: {}]   ;;  %s2964_s3 = inlined_call_operand.vmem [shape: bf16[352,32], index: 3, kind: output, shape index: {}]  }
   0x1   :  { %s2365_s14 = smov 0  }
   0x2 LB: > { %s1798_s15 = sadd.s32 4294967295, %s2336_s14   ;;  %s2378_s16 = sadd.s32 1, %s2336_s14   ;;  %s2336_s14 = sphi %s2365_s14, %s2980_s14   ;;  %s2332_s13 = sphi %s2363_s13, %s2979_s13   ;;  %s2328_s12 = sphi %s2361_s12, %s2978_s12  }
   0x3   : > { %s17_s17 = ssub.s32 %s2336_s14, %s2378_s16  ;;  %s20_s18 = sadd.s32 1, %s2332_s13 }
   0x4   : > { %p18_p0 = scmp.eq.s32.totalorder %s17_s17, 0  ;;  %p27_p1 = scmp.ne.s32.totalorder %s2332_s13, %s2328_s12 }
   0x5   : > { %p28_p2 = scmp.eq.s32.totalorder %s2336_s14, 0  ;;  %p1801_p4 = scmp.ge.s32.totalorder %s2336_s14, 2 }
   0x6   : > { %s2387_s19 = scalar_select %p18_p0, %s2332_s13, %s20_s18  }
   0x7   : > { %p29_p3 = por %p28_p2, %p27_p1  ;;  %127 = sbr.rel (%p1801_p4) target bundleno = 39 (0x27), region = 24 }
   0xc   : > { %130 = sbr.rel (!%p29_p3) target bundleno = 39 (0x27), region = 28  ;;  %s132_s20 = sand.u32 (%p29_p3), 1, %s2332_s13  }
   0xd   : > { %s1985_s21 = smul.u32 (%p29_p3), 88, %s2336_s14 }
   0xe   : > { %s2240_s22 = smul.u32 (%p29_p3), 352, %s132_s20 }
   0xf   : > { %s2395_s25 = scalar_lea.vmem (%p29_p3), %s2961_s0, %s1985_s21 }
  0x10   : > { %v154_v0 = vld [vmem:[%s2395_s25] sm:$0xff] (%p29_p3)   ;;  %v158_v1 = vld [vmem:[%s2395_s25 + $0x8] sm:$0xff] (%p29_p3)   ;;  %v162_v2 = vld [vmem:[%s2395_s25 + $0x10] sm:$0xff] (%p29_p3)   ;;  %s2400_s26 = scalar_lea.vmem (%p29_p3), [#allocation2], %s2240_s22 }
  0x11   : > { %155 = vst [vmem:[%s2400_s26] sm:$0xff] %v154_v0   ;;  %159 = vst [vmem:[%s2400_s26 + $0x8] sm:$0xff] %v158_v1   ;;  %v166_v3 = vld [vmem:[%s2395_s25 + $0x18] sm:$0xff]   ;;  %v170_v4 = vld [vmem:[%s2395_s25 + $0x20] sm:$0xff]  }
  0x12   : > { %163 = vst [vmem:[%s2400_s26 + $0x10] sm:$0xff] %v162_v2   ;;  %v174_v5 = vld [vmem:[%s2395_s25 + $0x28] sm:$0xff]   ;;  %167 = vst [vmem:[%s2400_s26 + $0x18] sm:$0xff] %v166_v3   ;;  %v178_v6 = vld [vmem:[%s2395_s25 + $0x30] sm:$0xff]  }
  0x13   : > { %171 = vst [vmem:[%s2400_s26 + $0x20] sm:$0xff] %v170_v4   ;;  %175 = vst [vmem:[%s2400_s26 + $0x28] sm:$0xff] %v174_v5   ;;  %v182_v7 = vld [vmem:[%s2395_s25 + $0x38] sm:$0xff]   ;;  %v186_v8 = vld [vmem:[%s2395_s25 + $0x40] sm:$0xff]  }
  0x14   : > { %179 = vst [vmem:[%s2400_s26 + $0x30] sm:$0xff] %v178_v6   ;;  %183 = vst [vmem:[%s2400_s26 + $0x38] sm:$0xff] %v182_v7   ;;  %v190_v9 = vld [vmem:[%s2395_s25 + $0x48] sm:$0xff]   ;;  %v194_v10 = vld [vmem:[%s2395_s25 + $0x50] sm:$0xff]  }
  0x15   : > { %187 = vst [vmem:[%s2400_s26 + $0x40] sm:$0xff] %v186_v8   ;;  %v198_v11 = vld [vmem:[%s2395_s25 + $0xb0] sm:$0xff]   ;;  %191 = vst [vmem:[%s2400_s26 + $0x48] sm:$0xff] %v190_v9   ;;  %v202_v12 = vld [vmem:[%s2395_s25 + $0xb8] sm:$0xff]  }
  0x16   : > { %195 = vst [vmem:[%s2400_s26 + $0x50] sm:$0xff] %v194_v10   ;;  %199 = vst [vmem:[%s2400_s26 + $0x58] sm:$0xff] %v198_v11   ;;  %v206_v13 = vld [vmem:[%s2395_s25 + $0xc0] sm:$0xff]   ;;  %v210_v14 = vld [vmem:[%s2395_s25 + $0xc8] sm:$0xff]  }
  0x17   : > { %203 = vst [vmem:[%s2400_s26 + $0x60] sm:$0xff] %v202_v12   ;;  %207 = vst [vmem:[%s2400_s26 + $0x68] sm:$0xff] %v206_v13   ;;  %v214_v15 = vld [vmem:[%s2395_s25 + $0xd0] sm:$0xff]   ;;  %v218_v16 = vld [vmem:[%s2395_s25 + $0xd8] sm:$0xff]  }
  0x18   : > { %211 = vst [vmem:[%s2400_s26 + $0x70] sm:$0xff] %v210_v14   ;;  %v222_v17 = vld [vmem:[%s2395_s25 + $0xe0] sm:$0xff]   ;;  %215 = vst [vmem:[%s2400_s26 + $0x78] sm:$0xff] %v214_v15   ;;  %v226_v18 = vld [vmem:[%s2395_s25 + $0xe8] sm:$0xff]  }
  0x19   : > { %219 = vst [vmem:[%s2400_s26 + $0x80] sm:$0xff] %v218_v16   ;;  %223 = vst [vmem:[%s2400_s26 + $0x88] sm:$0xff] %v222_v17   ;;  %v230_v19 = vld [vmem:[%s2395_s25 + $0xf0] sm:$0xff]   ;;  %v234_v20 = vld [vmem:[%s2395_s25 + $0xf8] sm:$0xff]  }
  0x1a   : > { %227 = vst [vmem:[%s2400_s26 + $0x90] sm:$0xff] %v226_v18   ;;  %231 = vst [vmem:[%s2400_s26 + $0x98] sm:$0xff] %v230_v19   ;;  %v238_v21 = vld [vmem:[%s2395_s25 + $0x100] sm:$0xff]   ;;  %v246_v23 = vld [vmem:[%s2395_s25 + $0x168] sm:$0xff]  }
  0x1b   : > { %235 = vst [vmem:[%s2400_s26 + $0xa0] sm:$0xff] %v234_v20   ;;  %v242_v22 = vld [vmem:[%s2395_s25 + $0x160] sm:$0xff]   ;;  %239 = vst [vmem:[%s2400_s26 + $0xa8] sm:$0xff] %v238_v21   ;;  %v250_v24 = vld [vmem:[%s2395_s25 + $0x170] sm:$0xff]  }
  0x1c   : > { %243 = vst [vmem:[%s2400_s26 + $0xb0] sm:$0xff] %v242_v22   ;;  %247 = vst [vmem:[%s2400_s26 + $0xb8] sm:$0xff] %v246_v23   ;;  %v254_v25 = vld [vmem:[%s2395_s25 + $0x178] sm:$0xff]   ;;  %v258_v26 = vld [vmem:[%s2395_s25 + $0x180] sm:$0xff]  }
  0x1d   : > { %251 = vst [vmem:[%s2400_s26 + $0xc0] sm:$0xff] %v250_v24   ;;  %255 = vst [vmem:[%s2400_s26 + $0xc8] sm:$0xff] %v254_v25   ;;  %v262_v27 = vld [vmem:[%s2395_s25 + $0x188] sm:$0xff]   ;;  %v266_v28 = vld [vmem:[%s2395_s25 + $0x190] sm:$0xff]  }
  0x1e   : > { %259 = vst [vmem:[%s2400_s26 + $0xd0] sm:$0xff] %v258_v26   ;;  %v270_v29 = vld [vmem:[%s2395_s25 + $0x198] sm:$0xff]   ;;  %263 = vst [vmem:[%s2400_s26 + $0xd8] sm:$0xff] %v262_v27   ;;  %v274_v30 = vld [vmem:[%s2395_s25 + $0x1a0] sm:$0xff]  }
  0x1f   : > { %267 = vst [vmem:[%s2400_s26 + $0xe0] sm:$0xff] %v266_v28   ;;  %271 = vst [vmem:[%s2400_s26 + $0xe8] sm:$0xff] %v270_v29   ;;  %v278_v31 = vld [vmem:[%s2395_s25 + $0x1a8] sm:$0xff]   ;;  %v282_v32 = vld [vmem:[%s2395_s25 + $0x1b0] sm:$0xff]  }
  0x20   : > { %275 = vst [vmem:[%s2400_s26 + $0xf0] sm:$0xff] %v274_v30   ;;  %279 = vst [vmem:[%s2400_s26 + $0xf8] sm:$0xff] %v278_v31   ;;  %v286_v33 = vld [vmem:[%s2395_s25 + $0x210] sm:$0xff]   ;;  %v290_v34 = vld [vmem:[%s2395_s25 + $0x218] sm:$0xff]  }
  0x21   : > { %283 = vst [vmem:[%s2400_s26 + $0x100] sm:$0xff] %v282_v32   ;;  %v294_v35 = vld [vmem:[%s2395_s25 + $0x220] sm:$0xff]   ;;  %287 = vst [vmem:[%s2400_s26 + $0x108] sm:$0xff] %v286_v33   ;;  %v298_v36 = vld [vmem:[%s2395_s25 + $0x228] sm:$0xff]  }
  0x22   : > { %291 = vst [vmem:[%s2400_s26 + $0x110] sm:$0xff] %v290_v34   ;;  %295 = vst [vmem:[%s2400_s26 + $0x118] sm:$0xff] %v294_v35   ;;  %v302_v37 = vld [vmem:[%s2395_s25 + $0x230] sm:$0xff]   ;;  %v306_v38 = vld [vmem:[%s2395_s25 + $0x238] sm:$0xff]  }
  0x23   : > { %299 = vst [vmem:[%s2400_s26 + $0x120] sm:$0xff] %v298_v36   ;;  %303 = vst [vmem:[%s2400_s26 + $0x128] sm:$0xff] %v302_v37   ;;  %v310_v39 = vld [vmem:[%s2395_s25 + $0x240] sm:$0xff]   ;;  %v314_v40 = vld [vmem:[%s2395_s25 + $0x248] sm:$0xff]  }
  0x24   : > { %307 = vst [vmem:[%s2400_s26 + $0x130] sm:$0xff] %v306_v38   ;;  %v318_v41 = vld [vmem:[%s2395_s25 + $0x250] sm:$0xff]   ;;  %311 = vst [vmem:[%s2400_s26 + $0x138] sm:$0xff] %v310_v39   ;;  %v322_v42 = vld [vmem:[%s2395_s25 + $0x258] sm:$0xff]  }
  0x25   : > { %315 = vst [vmem:[%s2400_s26 + $0x140] sm:$0xff] %v314_v40   ;;  %319 = vst [vmem:[%s2400_s26 + $0x148] sm:$0xff] %v318_v41   ;;  %v326_v43 = vld [vmem:[%s2395_s25 + $0x260] sm:$0xff]  }
  0x26   : > { %323 = vst [vmem:[%s2400_s26 + $0x150] sm:$0xff] %v322_v42   ;;  %327 = vst [vmem:[%s2400_s26 + $0x158] sm:$0xff] %v326_v43  }
  0x27 PF: > { %p1803_p5 = scmp.ge.s32.totalorder %s2336_s14, 1  ;;  %p528_p6 = scmp.lt.s32.totalorder %s2336_s14, 3 }
  0x29   : > { %p529_p7 = pnand %p1803_p5, %p528_p6 }
  0x2a   : > { %s535_s29 = sand.u32 (!%p529_p7), 1, %s2328_s12   ;;  %s559_s5 = smul.u32 (!%p529_p7), 22, %s1798_s15 }
  0x2b   : > { %532 = sbr.rel (%p529_p7) target bundleno = 432 (0x1b0), region = 69 }
  0x2c   : > { %s2241_s30 = smul.u32 (!%p529_p7), 352, %s535_s29  ;;  %p560_p8 = scmp.lt.s32.totalorder (!%p529_p7), %s559_s5, 43 }
  0x2e   : > { %s2499_s4 = scalar_lea.vmem (!%p529_p7), [#allocation2], %s2241_s30 }
  0x30   : > { %vm684_vm0 = vcmask 1043456   ;;  %v2338_v44 = vmov 0.0   ;;  %v2269_v45 = vld [vmem:[%s2962_s1] sm:$0x1f]   ;;  %vm685_vm1 = vcmask 1044480   ;;  %v2339_v46 = vmov 65535  }
  0x31   : > { %2056 = vmatprep.subr.bf16.mxu0 %v2338_v44  ;;  %2102 = vmatprep.subr.bf16.mxu1 %v2338_v44  ;;  %v686_v47 = vsel %vm684_vm0, 4294967295, %v2339_v46  ;;  %vm2340_vm2 = vmmov 0   ;;  %v2270_v50 = vld [vmem:[%s2499_s4] sm:$0xff]   ;;  %vm650_vm3 = vcmask 72704   ;;  %v2271_v51 = vld [vmem:[%s2499_s4 + $0x58] sm:$0xff]   ;;  %v2272_v52 = vld [vmem:[%s2499_s4 + $0x8] sm:$0xff]  }
  0x32   : > { %2058 = vmatprep.mubr.msk.bf16.mxu0 %vm2340_vm2, %v2338_v44  ;;  %2104 = vmatprep.mubr.msk.bf16.mxu1 %vm2340_vm2, %v2338_v44  ;;  %v687_v48 = vsel %vm685_vm1, %v686_v47, 0  ;;  %v2273_v53 = vld [vmem:[%s2499_s4 + $0x60] sm:$0xff]   ;;  %v2274_v54 = vld [vmem:[%s2499_s4 + $0x10] sm:$0xff]   ;;  %v2275_v55 = vld [vmem:[%s2499_s4 + $0x68] sm:$0xff]   ;;  %s2982_s5 = smov (!%p560_p8, %s559_s5), 43  ;;  %vm1713_vm4 = vcmask 257024  }
  0x33   : > { %v689_v49 = vand.u32 %v2269_v45, %v687_v48  ;;  %v2276_v56 = vld [vmem:[%s2499_s4 + $0x18] sm:$0xff]   ;;  %v2277_v57 = vld [vmem:[%s2499_s4 + $0x70] sm:$0xff]   ;;  %v2278_v58 = vld [vmem:[%s2499_s4 + $0x20] sm:$0xff]   ;;  %s1804_s8 = sshll.u32 %s2982_s5, 2 }
  0x34   : > { %v2279_v59 = vld [vmem:[%s2499_s4 + $0x78] sm:$0xff]   ;;  %v2280_v60 = vld [vmem:[%s2499_s4 + $0x28] sm:$0xff]   ;;  %v2281_v61 = vld [vmem:[%s2499_s4 + $0x80] sm:$0xff]   ;;  %s2824_s11 = scalar_lea.vmem %s2964_s3, %s1804_s8 }
  0x35   : > { %2057 = vmatpush3.bf16.msra.mxu0 %v689_v49  ;;  %2103 = vmatpush3.bf16.msra.mxu1 %v689_v49  ;;  %v2282_v62 = vld [vmem:[%s2499_s4 + $0x30] sm:$0xff]   ;;  %v2283_v63 = vld [vmem:[%s2499_s4 + $0x88] sm:$0xff]   ;;  %v2284_v0 = vld [vmem:[%s2499_s4 + $0x38] sm:$0xff]  }
  0x36   : > { %2148 = vmatprep.subr.bf16.mxu0 %v2338_v44  ;;  %2194 = vmatprep.subr.bf16.mxu1 %v2338_v44  ;;  %v2285_v1 = vld [vmem:[%s2499_s4 + $0x90] sm:$0xff]   ;;  %v2286_v2 = vld [vmem:[%s2499_s4 + $0x40] sm:$0xff]   ;;  %v2287_v3 = vld [vmem:[%s2499_s4 + $0x98] sm:$0xff]  }
  0x37   : > { %v2288_v4 = vld [vmem:[%s2499_s4 + $0x48] sm:$0xff]   ;;  %v2289_v5 = vld [vmem:[%s2499_s4 + $0xa0] sm:$0xff]   ;;  %v2290_v6 = vld [vmem:[%s2499_s4 + $0x50] sm:$0xff]  }
  0x38   : > { %2059 = vmatmul.mubr.msk.bf16.vlgmr.msra.gmra.mxu0 %vm650_vm3, %v2270_v50  ;;  %2105 = vmatmul.mubr.msk.bf16.vlgmr.msra.gmra.mxu1 %vm650_vm3, %v2271_v51  ;;  %v2291_v7 = vld [vmem:[%s2499_s4 + $0xa8] sm:$0xff]   ;;  %v2292_v8 = vld [vmem:[%s2499_s4 + $0xb0] sm:$0xff]   ;;  %v2294_v10 = vld [vmem:[%s2499_s4 + $0xb8] sm:$0xff]  }
  0x39   : > { %2149 = vmatpush3.bf16.msra.mxu0 %v689_v49  ;;  %2195 = vmatpush3.bf16.msra.mxu1 %v689_v49  ;;  %v2293_v9 = vld [vmem:[%s2499_s4 + $0x108] sm:$0xff]   ;;  %v2295_v11 = vld [vmem:[%s2499_s4 + $0x110] sm:$0xff]   ;;  %v2296_v12 = vld [vmem:[%s2499_s4 + $0xc0] sm:$0xff]  }
  0x3a   : > { %2062 = vmatprep.mubr.msk.bf16.mxu0 %vm2340_vm2, %v2338_v44  ;;  %2108 = vmatprep.mubr.msk.bf16.mxu1 %vm2340_vm2, %v2338_v44  ;;  %v2297_v13 = vld [vmem:[%s2499_s4 + $0x118] sm:$0xff]   ;;  %v2298_v14 = vld [vmem:[%s2499_s4 + $0xc8] sm:$0xff]   ;;  %v2299_v15 = vld [vmem:[%s2499_s4 + $0x120] sm:$0xff]  }
  0x3b   : > { %v2300_v16 = vld [vmem:[%s2499_s4 + $0xd0] sm:$0xff]   ;;  %v2301_v17 = vld [vmem:[%s2499_s4 + $0x128] sm:$0xff]   ;;  %v2302_v18 = vld [vmem:[%s2499_s4 + $0xd8] sm:$0xff]  }
  0x3c   : > { %v2303_v19 = vld [vmem:[%s2499_s4 + $0x130] sm:$0xff]   ;;  %v2304_v20 = vld [vmem:[%s2499_s4 + $0xe0] sm:$0xff]   ;;  %v2305_v21 = vld [vmem:[%s2499_s4 + $0x138] sm:$0xff]  }
  0x3d   : > { %v2306_v22 = vld [vmem:[%s2499_s4 + $0xe8] sm:$0xff]   ;;  %v2307_v23 = vld [vmem:[%s2499_s4 + $0x140] sm:$0xff]   ;;  %v2308_v24 = vld [vmem:[%s2499_s4 + $0xf0] sm:$0xff]  }
  0x3e   : > { %v2309_v25 = vld [vmem:[%s2499_s4 + $0x148] sm:$0xff]   ;;  %v2310_v26 = vld [vmem:[%s2499_s4 + $0xf8] sm:$0xff]   ;;  %v2311_v27 = vld [vmem:[%s2499_s4 + $0x150] sm:$0xff]  }
  0x3f   : > { %v2312_v28 = vld [vmem:[%s2499_s4 + $0x100] sm:$0xff]   ;;  %v2313_v29 = vld [vmem:[%s2499_s4 + $0x158] sm:$0xff]  }
  0x40   : > { %2063 = vmatmul.mubr.msk.bf16.gmra.mxu0 %vm650_vm3, %v2272_v52  ;;  %2109 = vmatmul.mubr.msk.bf16.gmra.mxu1 %vm650_vm3, %v2273_v53 }
  0x41   : > { %2066 = vmatprep.mubr.msk.bf16.mxu0 %vm2340_vm2, %v2338_v44  ;;  %2112 = vmatprep.mubr.msk.bf16.mxu1 %vm2340_vm2, %v2338_v44 }
  0x48   : > { %2067 = vmatmul.mubr.msk.bf16.gmra.mxu0 %vm650_vm3, %v2274_v54  ;;  %2113 = vmatmul.mubr.msk.bf16.gmra.mxu1 %vm650_vm3, %v2275_v55 }
  0x49   : > { %2070 = vmatprep.mubr.msk.bf16.mxu0 %vm2340_vm2, %v2338_v44  ;;  %2116 = vmatprep.mubr.msk.bf16.mxu1 %vm2340_vm2, %v2338_v44 }
  0x50   : > { %2071 = vmatmul.mubr.msk.bf16.gmra.mxu0 %vm650_vm3, %v2276_v56  ;;  %2117 = vmatmul.mubr.msk.bf16.gmra.mxu1 %vm650_vm3, %v2277_v57 }
  0x51   : > { %2074 = vmatprep.mubr.msk.bf16.mxu0 %vm2340_vm2, %v2338_v44  ;;  %2120 = vmatprep.mubr.msk.bf16.mxu1 %vm2340_vm2, %v2338_v44 }
  0x58   : > { %2075 = vmatmul.mubr.msk.bf16.gmra.mxu0 %vm650_vm3, %v2278_v58  ;;  %2121 = vmatmul.mubr.msk.bf16.gmra.mxu1 %vm650_vm3, %v2279_v59 }
  0x59   : > { %2078 = vmatprep.mubr.msk.bf16.mxu0 %vm2340_vm2, %v2338_v44  ;;  %2124 = vmatprep.mubr.msk.bf16.mxu1 %vm2340_vm2, %v2338_v44 }
  0x60   : > { %2079 = vmatmul.mubr.msk.bf16.gmra.mxu0 %vm650_vm3, %v2280_v60  ;;  %2125 = vmatmul.mubr.msk.bf16.gmra.mxu1 %vm650_vm3, %v2281_v61 }
  0x61   : > { %2082 = vmatprep.mubr.msk.bf16.mxu0 %vm2340_vm2, %v2338_v44  ;;  %2128 = vmatprep.mubr.msk.bf16.mxu1 %vm2340_vm2, %v2338_v44 }
  0x68   : > { %2083 = vmatmul.mubr.msk.bf16.gmra.mxu0 %vm650_vm3, %v2282_v62  ;;  %2129 = vmatmul.mubr.msk.bf16.gmra.mxu1 %vm650_vm3, %v2283_v63 }
  0x69   : > { %2086 = vmatprep.mubr.msk.bf16.mxu0 %vm2340_vm2, %v2338_v44  ;;  %2132 = vmatprep.mubr.msk.bf16.mxu1 %vm2340_vm2, %v2338_v44 }
  0x70   : > { %2087 = vmatmul.mubr.msk.bf16.gmra.mxu0 %vm650_vm3, %v2284_v0  ;;  %2133 = vmatmul.mubr.msk.bf16.gmra.mxu1 %vm650_vm3, %v2285_v1 }
  0x71   : > { %2090 = vmatprep.mubr.msk.bf16.mxu0 %vm2340_vm2, %v2338_v44  ;;  %2136 = vmatprep.mubr.msk.bf16.mxu1 %vm2340_vm2, %v2338_v44 }
  0x78   : > { %2091 = vmatmul.mubr.msk.bf16.gmra.mxu0 %vm650_vm3, %v2286_v2  ;;  %2137 = vmatmul.mubr.msk.bf16.gmra.mxu1 %vm650_vm3, %v2287_v3 }
  0x79   : > { %2094 = vmatprep.mubr.msk.bf16.mxu0 %vm2340_vm2, %v2338_v44  ;;  %2140 = vmatprep.mubr.msk.bf16.mxu1 %vm2340_vm2, %v2338_v44 }
  0x80   : > { %2095 = vmatmul.mubr.msk.bf16.gmra.mxu0 %vm650_vm3, %v2288_v4  ;;  %2141 = vmatmul.mubr.msk.bf16.gmra.mxu1 %vm650_vm3, %v2289_v5 }
  0x81   : > { %2098 = vmatprep.mubr.msk.bf16.mxu0 %vm2340_vm2, %v2338_v44  ;;  %2144 = vmatprep.mubr.msk.bf16.mxu1 %vm2340_vm2, %v2338_v44 }
  0x88   : > { %2099 = vmatmul.mubr.msk.bf16.gmra.mxu0 %vm650_vm3, %v2290_v6  ;;  %2145 = vmatmul.mubr.msk.bf16.gmra.mxu1 %vm650_vm3, %v2291_v7 }
  0x89   : > { %2150 = vmatprep.mubr.msk.bf16.mxu0 %vm2340_vm2, %v2338_v44  ;;  %2196 = vmatprep.mubr.msk.bf16.mxu1 %vm2340_vm2, %v2338_v44 }
  0x90   : > { %2151 = vmatmul.mubr.msk.bf16.vlgmr.msra.gmra.mxu0 %vm650_vm3, %v2292_v8  ;;  %2197 = vmatmul.mubr.msk.bf16.vlgmr.msra.gmra.mxu1 %vm650_vm3, %v2293_v9 }
  0x91   : > { %2154 = vmatprep.mubr.msk.bf16.mxu0 %vm2340_vm2, %v2338_v44  ;;  %2200 = vmatprep.mubr.msk.bf16.mxu1 %vm2340_vm2, %v2338_v44 }
  0x98   : > { %2155 = vmatmul.mubr.msk.bf16.gmra.mxu0 %vm650_vm3, %v2294_v10  ;;  %2201 = vmatmul.mubr.msk.bf16.gmra.mxu1 %vm650_vm3, %v2295_v11 }
  0x99   : > { %2158 = vmatprep.mubr.msk.bf16.mxu0 %vm2340_vm2, %v2338_v44  ;;  %2204 = vmatprep.mubr.msk.bf16.mxu1 %vm2340_vm2, %v2338_v44 }
  0xa0   : > { %2159 = vmatmul.mubr.msk.bf16.gmra.mxu0 %vm650_vm3, %v2296_v12  ;;  %2205 = vmatmul.mubr.msk.bf16.gmra.mxu1 %vm650_vm3, %v2297_v13 }
  0xa1   : > { %2162 = vmatprep.mubr.msk.bf16.mxu0 %vm2340_vm2, %v2338_v44  ;;  %2208 = vmatprep.mubr.msk.bf16.mxu1 %vm2340_vm2, %v2338_v44 }
  0xa8   : > { %2163 = vmatmul.mubr.msk.bf16.gmra.mxu0 %vm650_vm3, %v2298_v14  ;;  %2209 = vmatmul.mubr.msk.bf16.gmra.mxu1 %vm650_vm3, %v2299_v15 }
  0xa9   : > { %2166 = vmatprep.mubr.msk.bf16.mxu0 %vm2340_vm2, %v2338_v44  ;;  %2212 = vmatprep.mubr.msk.bf16.mxu1 %vm2340_vm2, %v2338_v44 }
  0xb0   : > { %2167 = vmatmul.mubr.msk.bf16.gmra.mxu0 %vm650_vm3, %v2300_v16  ;;  %2213 = vmatmul.mubr.msk.bf16.gmra.mxu1 %vm650_vm3, %v2301_v17 }
  0xb1   : > { %2170 = vmatprep.mubr.msk.bf16.mxu0 %vm2340_vm2, %v2338_v44  ;;  %2216 = vmatprep.mubr.msk.bf16.mxu1 %vm2340_vm2, %v2338_v44 }
  0xb8   : > { %2171 = vmatmul.mubr.msk.bf16.gmra.mxu0 %vm650_vm3, %v2302_v18  ;;  %2217 = vmatmul.mubr.msk.bf16.gmra.mxu1 %vm650_vm3, %v2303_v19 }
  0xb9   : > { %2174 = vmatprep.mubr.msk.bf16.mxu0 %vm2340_vm2, %v2338_v44  ;;  %2220 = vmatprep.mubr.msk.bf16.mxu1 %vm2340_vm2, %v2338_v44 }
  0xc0   : > { %2175 = vmatmul.mubr.msk.bf16.gmra.mxu0 %vm650_vm3, %v2304_v20  ;;  %2221 = vmatmul.mubr.msk.bf16.gmra.mxu1 %vm650_vm3, %v2305_v21 }
  0xc1   : > { %2178 = vmatprep.mubr.msk.bf16.mxu0 %vm2340_vm2, %v2338_v44  ;;  %2224 = vmatprep.mubr.msk.bf16.mxu1 %vm2340_vm2, %v2338_v44 }
  0xc8   : > { %2179 = vmatmul.mubr.msk.bf16.gmra.mxu0 %vm650_vm3, %v2306_v22  ;;  %2225 = vmatmul.mubr.msk.bf16.gmra.mxu1 %vm650_vm3, %v2307_v23 }
  0xc9   : > { %2182 = vmatprep.mubr.msk.bf16.mxu0 %vm2340_vm2, %v2338_v44  ;;  %2228 = vmatprep.mubr.msk.bf16.mxu1 %vm2340_vm2, %v2338_v44 }
  0xd0   : > { %2183 = vmatmul.mubr.msk.bf16.gmra.mxu0 %vm650_vm3, %v2308_v24  ;;  %2229 = vmatmul.mubr.msk.bf16.gmra.mxu1 %vm650_vm3, %v2309_v25 }
  0xd1   : > { %2186 = vmatprep.mubr.msk.bf16.mxu0 %vm2340_vm2, %v2338_v44  ;;  %2232 = vmatprep.mubr.msk.bf16.mxu1 %vm2340_vm2, %v2338_v44 }
  0xd8   : > { %2187 = vmatmul.mubr.msk.bf16.gmra.mxu0 %vm650_vm3, %v2310_v26  ;;  %2233 = vmatmul.mubr.msk.bf16.gmra.mxu1 %vm650_vm3, %v2311_v27 }
  0xd9   : > { %2190 = vmatprep.mubr.msk.bf16.mxu0 %vm2340_vm2, %v2338_v44  ;;  %2236 = vmatprep.mubr.msk.bf16.mxu1 %vm2340_vm2, %v2338_v44 }
  0xe0   : > { %2191 = vmatmul.mubr.msk.bf16.gmra.mxu0 %vm650_vm3, %v2312_v28  ;;  %2237 = vmatmul.mubr.msk.bf16.gmra.mxu1 %vm650_vm3, %v2313_v29 }
  0xf8   : > { %v2675_v30 = vpop.f32.mrf.mxu0  ;;  %v2677_v31 = vpop.f32.mrf.mxu1 }
  0xf9   : > { %v1044_v32 = vmax.f32 %v2675_v30, %v2677_v31 }
  0xfa   : > { %v2060_v33 = vpop.f32.mrf.mxu0  ;;  %v2106_v34 = vpop.f32.mrf.mxu1 }
  0xfc   : > { %v2681_v35 = vpop.f32.mrf.mxu0  ;;  %v2683_v36 = vpop.f32.mrf.mxu1 }
  0xfd   : > { %v1045_v37 = vmax.f32 %v2681_v35, %v2683_v36 }
  0xfe   : > { %v2061_v38 = vpop.f32.mrf.mxu0  ;;  %v2107_v39 = vpop.f32.mrf.mxu1 }
 0x100   : > { %v2687_v40 = vpop.f32.mrf.mxu0  ;;  %v2689_v41 = vpop.f32.mrf.mxu1 }
 0x101   : > { %v1046_v42 = vmax.f32 %v2687_v40, %v2689_v41 }
 0x102   : > { %v2064_v43 = vpop.f32.mrf.mxu0  ;;  %v2110_v44 = vpop.f32.mrf.mxu1 }
 0x104   : > { %v2693_v45 = vpop.f32.mrf.mxu0  ;;  %v2695_v46 = vpop.f32.mrf.mxu1 }
 0x105   : > { %v1047_v47 = vmax.f32 %v2693_v45, %v2695_v46 }
 0x106   : > { %v2065_v48 = vpop.f32.mrf.mxu0  ;;  %v2111_v49 = vpop.f32.mrf.mxu1 }
 0x108   : > { %v2699_v50 = vpop.f32.mrf.mxu0  ;;  %v2701_v51 = vpop.f32.mrf.mxu1 }
 0x109   : > { %v1048_v52 = vmax.f32 %v2699_v50, %v2701_v51 }
 0x10a   : > { %v2068_v53 = vpop.f32.mrf.mxu0  ;;  %v2114_v54 = vpop.f32.mrf.mxu1 }
 0x10c   : > { %v2705_v55 = vpop.f32.mrf.mxu0  ;;  %v2707_v56 = vpop.f32.mrf.mxu1 }
 0x10d   : > { %v1049_v57 = vmax.f32 %v2705_v55, %v2707_v56 }
 0x10e   : > { %v2069_v58 = vpop.f32.mrf.mxu0  ;;  %v2115_v59 = vpop.f32.mrf.mxu1 }
 0x110   : > { %v2711_v60 = vpop.f32.mrf.mxu0  ;;  %v2713_v61 = vpop.f32.mrf.mxu1 }
 0x111   : > { %v1050_v62 = vmax.f32 %v2711_v60, %v2713_v61 }
 0x112   : > { %v2072_v63 = vpop.f32.mrf.mxu0  ;;  %v2118_v0 = vpop.f32.mrf.mxu1 }
 0x114   : > { %v2717_v1 = vpop.f32.mrf.mxu0  ;;  %v2719_v2 = vpop.f32.mrf.mxu1 }
 0x115   : > { %v1051_v3 = vmax.f32 %v2717_v1, %v2719_v2 }
 0x116   : > { %v2073_v4 = vpop.f32.mrf.mxu0  ;;  %v2119_v5 = vpop.f32.mrf.mxu1 }
 0x118   : > { %v2723_v6 = vpop.f32.mrf.mxu0  ;;  %v2725_v7 = vpop.f32.mrf.mxu1 }
 0x119   : > { %v1052_v8 = vmax.f32 %v2723_v6, %v2725_v7 }
 0x11a   : > { %v2076_v9 = vpop.f32.mrf.mxu0  ;;  %v2122_v10 = vpop.f32.mrf.mxu1 }
 0x11c   : > { %v2729_v11 = vpop.f32.mrf.mxu0  ;;  %v2731_v12 = vpop.f32.mrf.mxu1 }
 0x11e   : > { %v2077_v14 = vpop.f32.mrf.mxu0  ;;  %v2123_v15 = vpop.f32.mrf.mxu1 }
 0x120   : > { %v2735_v16 = vpop.f32.mrf.mxu0  ;;  %v2737_v17 = vpop.f32.mrf.mxu1 }
 0x122   : > { %v2080_v19 = vpop.f32.mrf.mxu0  ;;  %v2126_v20 = vpop.f32.mrf.mxu1 }
 0x124   : > { %v2741_v21 = vpop.f32.mrf.mxu0  ;;  %v2743_v22 = vpop.f32.mrf.mxu1 }
 0x126   : > { %v2081_v24 = vpop.f32.mrf.mxu0  ;;  %v2127_v25 = vpop.f32.mrf.mxu1 }
 0x128   : > { %v2747_v26 = vpop.f32.mrf.mxu0  ;;  %v2749_v27 = vpop.f32.mrf.mxu1 }
 0x12a   : > { %v2084_v29 = vpop.f32.mrf.mxu0  ;;  %v2130_v33 = vpop.f32.mrf.mxu1 }
 0x12c   : > { %v2753_v34 = vpop.f32.mrf.mxu0  ;;  %v2755_v38 = vpop.f32.mrf.mxu1 }
 0x12e   : > { %v2085_v43 = vpop.f32.mrf.mxu0  ;;  %v2131_v44 = vpop.f32.mrf.mxu1 }
 0x130   : > { %v2759_v48 = vpop.f32.mrf.mxu0  ;;  %v2761_v49 = vpop.f32.mrf.mxu1 }
 0x132   : > { %v2088_v54 = vpop.f32.mrf.mxu0  ;;  %v2134_v58 = vpop.f32.mrf.mxu1 }
 0x134   : > { %v2765_v59 = vpop.f32.mrf.mxu0  ;;  %v2767_v63 = vpop.f32.mrf.mxu1 }
 0x136   : > { %v2089_v4 = vpop.f32.mrf.mxu0  ;;  %v2135_v5 = vpop.f32.mrf.mxu1 }
 0x138   : > { %v2771_v9 = vpop.f32.mrf.mxu0  ;;  %v2773_v10 = vpop.f32.mrf.mxu1 }
 0x13a   : > { %v2092_v15 = vpop.f32.mrf.mxu0  ;;  %v2138_v19 = vpop.f32.mrf.mxu1 }
 0x13c   : > { %v2777_v20 = vpop.f32.mrf.mxu0  ;;  %v2779_v24 = vpop.f32.mrf.mxu1 }
 0x13e   : > { %v2093_v29 = vpop.f32.mrf.mxu0  ;;  %v2139_v33 = vpop.f32.mrf.mxu1 }
 0x140   : > { %v2783_v43 = vpop.f32.mrf.mxu0  ;;  %v2785_v44 = vpop.f32.mrf.mxu1 }
 0x142   : > { %v2096_v58 = vpop.f32.mrf.mxu0  ;;  %v2142_v4 = vpop.f32.mrf.mxu1 }
 0x144   : > { %v2789_v5 = vpop.f32.mrf.mxu0  ;;  %v2791_v15 = vpop.f32.mrf.mxu1 }
 0x146   : > { %v2097_v25 = vpop.f32.mrf.mxu0  ;;  %v2143_v14 = vpop.f32.mrf.mxu1 }
 0x148   : > { %v2795_v29 = vpop.f32.mrf.mxu0  ;;  %v2797_v33 = vpop.f32.mrf.mxu1 }
 0x14a   : > { %v2100_v58 = vpop.f32.mrf.mxu0  ;;  %v2146_v4 = vpop.f32.mrf.mxu1 }
 0x14b   : > { %v2815_v58 = vld [vmem:[%s2963_s2] ss:$0 sm:$0xff] }
 0x14c   : > { %v2803_v54 = vpop.f32.mrf.mxu0  ;;  %v2805_v53 = vpop.f32.mrf.mxu1 }
 0x14e   : > { %v2101_v14 = vpop.f32.mrf.mxu0  ;;  %v2147_v25 = vpop.f32.mrf.mxu1 }
 0x150   : > { %v1211_v39 = vpop.f32.mrf.mxu0  ;;  %v1465_v28 = vpop.f32.mrf.mxu1 }
 0x151   : > { %v1298_v0 = vmax.f32 %v1044_v32, %v1211_v39 }
 0x152   : > { %v2152_v4 = vpop.f32.mrf.mxu0  ;;  %v2198_v23 = vpop.f32.mrf.mxu1 }
 0x153   : > { %v1552_v18 = vmax.f32 %v1298_v0, %v1465_v28 }
 0x154   : > { %v1214_v13 = vpop.f32.mrf.mxu0  ;;  %v1468_v19 = vpop.f32.mrf.mxu1 }
 0x155   : > { %v1581_v14 = vadd.f32 %v2815_v58, %v1552_v18  ;;  %v1299_v25 = vmax.f32 %v1045_v37, %v1214_v13 }
 0x156   : > { %v2153_v30 = vpop.f32.mrf.mxu0  ;;  %v2199_v31 = vpop.f32.mrf.mxu1 }
 0x157   : > { %v1603_v32 = vmax.f32 %v1581_v14, 0.0  ;;  %v1553_v39 = vmax.f32 %v1299_v25, %v1468_v19 }
 0x158   : > { %v1219_v23 = vpop.f32.mrf.mxu0  ;;  %v1473_v28 = vpop.f32.mrf.mxu1 }
 0x159   : > { %v1986_v0 = vpack.c.bf16 %v1603_v32, %v1603_v32  ;;  %v1582_v18 = vadd.f32 %v2815_v58, %v1553_v39  ;;  %v1300_v35 = vmax.f32 %v1046_v42, %v1219_v23 }
 0x15a   : > { %v2156_v36 = vpop.f32.mrf.mxu0  ;;  %v2202_v37 = vpop.f32.mrf.mxu1 }
 0x15b   : > { %1714 = vst.msk [vmem:[%s2824_s11] sm:$0xf] %vm1713_vm4, %v1986_v0  ;;  %v1604_v13 = vmax.f32 %v1582_v18, 0.0  ;;  %v1554_v19 = vmax.f32 %v1300_v35, %v1473_v28 }
 0x15c   : > { %v1222_v4 = vpop.f32.mrf.mxu0  ;;  %v1476_v14 = vpop.f32.mrf.mxu1 }
 0x15d   : > { %v1987_v25 = vpack.c.bf16 %v1604_v13, %v1604_v13  ;;  %v1583_v30 = vadd.f32 %v2815_v58, %v1554_v19  ;;  %v1301_v31 = vmax.f32 %v1047_v47, %v1222_v4 }
 0x15e   : > { %v2157_v32 = vpop.f32.mrf.mxu0  ;;  %v2203_v39 = vpop.f32.mrf.mxu1 }
 0x15f   : > { %1715 = vst.msk [vmem:[%s2824_s11 + $0x4] sm:$0xf] %vm1713_vm4, %v1987_v25  ;;  %v1605_v40 = vmax.f32 %v1583_v30, 0.0  ;;  %v1555_v41 = vmax.f32 %v1301_v31, %v1476_v14 }
 0x160   : > { %v1227_v42 = vpop.f32.mrf.mxu0  ;;  %v1481_v23 = vpop.f32.mrf.mxu1 }
 0x161   : > { %v1988_v28 = vpack.c.bf16 %v1605_v40, %v1605_v40  ;;  %v1584_v0 = vadd.f32 %v2815_v58, %v1555_v41  ;;  %v1302_v18 = vmax.f32 %v1048_v52, %v1227_v42 }
 0x162   : > { %v2160_v35 = vpop.f32.mrf.mxu0  ;;  %v2206_v36 = vpop.f32.mrf.mxu1 }
 0x163   : > { %1716 = vst.msk [vmem:[%s2824_s11 + $0x8] sm:$0xf] %vm1713_vm4, %v1988_v28  ;;  %v1606_v45 = vmax.f32 %v1584_v0, 0.0  ;;  %v1556_v46 = vmax.f32 %v1302_v18, %v1481_v23 }
 0x164   : > { %v1230_v47 = vpop.f32.mrf.mxu0  ;;  %v1484_v37 = vpop.f32.mrf.mxu1 }
 0x165   : > { %v1989_v13 = vpack.c.bf16 %v1606_v45, %v1606_v45  ;;  %v1585_v19 = vadd.f32 %v2815_v58, %v1556_v46  ;;  %v1303_v4 = vmax.f32 %v1049_v57, %v1230_v47 }
 0x166   : > { %v2161_v14 = vpop.f32.mrf.mxu0  ;;  %v2207_v25 = vpop.f32.mrf.mxu1 }
 0x167   : > { %1717 = vst.msk [vmem:[%s2824_s11 + $0xc] sm:$0xf] %vm1713_vm4, %v1989_v13  ;;  %v1607_v50 = vmax.f32 %v1585_v19, 0.0  ;;  %v1557_v51 = vmax.f32 %v1303_v4, %v1484_v37  ;;  %v2965_v25 = vmax.f32 %v2729_v11, %v2731_v12 }
 0x168   : > { %v1235_v52 = vpop.f32.mrf.mxu0  ;;  %v1489_v30 = vpop.f32.mrf.mxu1 }
 0x169   : > { %v1990_v31 = vpack.c.bf16 %v1607_v50, %v1607_v50  ;;  %v1586_v32 = vadd.f32 %v2815_v58, %v1557_v51  ;;  %v1304_v39 = vmax.f32 %v1050_v62, %v1235_v52 }
 0x16a   : > { %v2164_v40 = vpop.f32.mrf.mxu0  ;;  %v2210_v41 = vpop.f32.mrf.mxu1 }
 0x16b   : > { %1718 = vst.msk [vmem:[%s2824_s11 + $0x10] sm:$0xf] %vm1713_vm4, %v1990_v31  ;;  %v1608_v55 = vmax.f32 %v1586_v32, 0.0  ;;  %v1558_v56 = vmax.f32 %v1304_v39, %v1489_v30  ;;  %v2966_v39 = vmax.f32 %v2735_v16, %v2737_v17 }
 0x16c   : > { %v1238_v57 = vpop.f32.mrf.mxu0  ;;  %v1492_v42 = vpop.f32.mrf.mxu1 }
 0x16d   : > { %v1991_v23 = vpack.c.bf16 %v1608_v55, %v1608_v55  ;;  %v1587_v28 = vadd.f32 %v2815_v58, %v1558_v56  ;;  %v1305_v0 = vmax.f32 %v1051_v3, %v1238_v57 }
 0x16e   : > { %v2165_v18 = vpop.f32.mrf.mxu0  ;;  %v2211_v35 = vpop.f32.mrf.mxu1 }
 0x16f   : > { %1719 = vst.msk [vmem:[%s2824_s11 + $0x14] sm:$0xf] %vm1713_vm4, %v1991_v23  ;;  %v1609_v60 = vmax.f32 %v1587_v28, 0.0  ;;  %v1559_v61 = vmax.f32 %v1305_v0, %v1492_v42  ;;  %v2967_v28 = vmax.f32 %v2741_v21, %v2743_v22 }
 0x170   : > { %v1243_v62 = vpop.f32.mrf.mxu0  ;;  %v1497_v36 = vpop.f32.mrf.mxu1 }
 0x171   : > { %v1992_v45 = vpack.c.bf16 %v1609_v60, %v1609_v60  ;;  %v1588_v46 = vadd.f32 %v2815_v58, %v1559_v61  ;;  %v1306_v47 = vmax.f32 %v1052_v8, %v1243_v62 }
 0x172   : > { %v2168_v37 = vpop.f32.mrf.mxu0  ;;  %v2214_v13 = vpop.f32.mrf.mxu1 }
 0x173   : > { %1720 = vst.msk [vmem:[%s2824_s11 + $0x18] sm:$0xf] %vm1713_vm4, %v1992_v45  ;;  %v1610_v1 = vmax.f32 %v1588_v46, 0.0  ;;  %v1560_v2 = vmax.f32 %v1306_v47, %v1497_v36  ;;  %v2968_v45 = vmax.f32 %v2747_v26, %v2749_v27 }
 0x174   : > { %v1246_v3 = vpop.f32.mrf.mxu0  ;;  %v1500_v19 = vpop.f32.mrf.mxu1 }
 0x175   : > { %v1993_v4 = vpack.c.bf16 %v1610_v1, %v1610_v1  ;;  %v1589_v14 = vadd.f32 %v2815_v58, %v1560_v2  ;;  %v1307_v50 = vmax.f32 %v2965_v25, %v1246_v3 }
 0x176   : > { %v2169_v51 = vpop.f32.mrf.mxu0  ;;  %v2215_v52 = vpop.f32.mrf.mxu1 }
 0x177   : > { %1721 = vst.msk [vmem:[%s2824_s11 + $0x1c] sm:$0xf] %vm1713_vm4, %v1993_v4  ;;  %v1611_v6 = vmax.f32 %v1589_v14, 0.0  ;;  %v1561_v7 = vmax.f32 %v1307_v50, %v1500_v19  ;;  %v2969_v19 = vmax.f32 %v2753_v34, %v2755_v38 }
 0x178   : > { %v1251_v8 = vpop.f32.mrf.mxu0  ;;  %v1505_v30 = vpop.f32.mrf.mxu1 }
 0x179   : > { %v1994_v31 = vpack.c.bf16 %v1611_v6, %v1611_v6  ;;  %v1590_v32 = vadd.f32 %v2815_v58, %v1561_v7  ;;  %v1308_v40 = vmax.f32 %v2966_v39, %v1251_v8  ;;  %v2970_v7 = vmax.f32 %v2759_v48, %v2761_v49 }
 0x17a   : > { %v2172_v41 = vpop.f32.mrf.mxu0  ;;  %v2218_v55 = vpop.f32.mrf.mxu1 }
 0x17b   : > { %1722 = vst.msk [vmem:[%s2824_s11 + $0x20] sm:$0xf] %vm1713_vm4, %v1994_v31  ;;  %v1612_v11 = vmax.f32 %v1590_v32, 0.0  ;;  %v1562_v12 = vmax.f32 %v1308_v40, %v1505_v30  ;;  %v2971_v55 = vmax.f32 %v2765_v59, %v2767_v63 }
 0x17c   : > { %v1254_v56 = vpop.f32.mrf.mxu0  ;;  %v1508_v57 = vpop.f32.mrf.mxu1 }
 0x17d   : > { %v1995_v42 = vpack.c.bf16 %v1612_v11, %v1612_v11  ;;  %v1591_v23 = vadd.f32 %v2815_v58, %v1562_v12  ;;  %v1309_v0 = vmax.f32 %v2967_v28, %v1254_v56 }
 0x17e   : > { %v2173_v18 = vpop.f32.mrf.mxu0  ;;  %v2219_v35 = vpop.f32.mrf.mxu1 }
 0x17f   : > { %1723 = vst.msk [vmem:[%s2824_s11 + $0x24] sm:$0xf] %vm1713_vm4, %v1995_v42  ;;  %v1613_v16 = vmax.f32 %v1591_v23, 0.0  ;;  %v1563_v17 = vmax.f32 %v1309_v0, %v1508_v57  ;;  %v2972_v0 = vmax.f32 %v2771_v9, %v2773_v10 }
 0x180   : > { %v1259_v60 = vpop.f32.mrf.mxu0  ;;  %v1513_v61 = vpop.f32.mrf.mxu1 }
 0x181   : > { %v1996_v62 = vpack.c.bf16 %v1613_v16, %v1613_v16  ;;  %v1592_v36 = vadd.f32 %v2815_v58, %v1563_v17  ;;  %v1310_v46 = vmax.f32 %v2968_v45, %v1259_v60 }
 0x182   : > { %v2176_v47 = vpop.f32.mrf.mxu0  ;;  %v2222_v37 = vpop.f32.mrf.mxu1 }
 0x183   : > { %1724 = vst.msk [vmem:[%s2824_s11 + $0x28] sm:$0xf] %vm1713_vm4, %v1996_v62  ;;  %v1614_v21 = vmax.f32 %v1592_v36, 0.0  ;;  %v1564_v22 = vmax.f32 %v1310_v46, %v1513_v61  ;;  %v2973_v36 = vmax.f32 %v2777_v20, %v2779_v24 }
 0x184   : > { %v1262_v13 = vpop.f32.mrf.mxu0  ;;  %v1516_v1 = vpop.f32.mrf.mxu1 }
 0x185   : > { %v1997_v2 = vpack.c.bf16 %v1614_v21, %v1614_v21  ;;  %v1593_v3 = vadd.f32 %v2815_v58, %v1564_v22  ;;  %v1311_v4 = vmax.f32 %v2969_v19, %v1262_v13 }
 0x186   : > { %v2177_v14 = vpop.f32.mrf.mxu0  ;;  %v2223_v25 = vpop.f32.mrf.mxu1 }
 0x187   : > { %1725 = vst.msk [vmem:[%s2824_s11 + $0x2c] sm:$0xf] %vm1713_vm4, %v1997_v2  ;;  %v1615_v26 = vmax.f32 %v1593_v3, 0.0  ;;  %v1565_v27 = vmax.f32 %v1311_v4, %v1516_v1  ;;  %v2974_v1 = vmax.f32 %v2783_v43, %v2785_v44 }
 0x188   : > { %v1267_v50 = vpop.f32.mrf.mxu0  ;;  %v1521_v51 = vpop.f32.mrf.mxu1 }
 0x189   : > { %v1998_v52 = vpack.c.bf16 %v1615_v26, %v1615_v26  ;;  %v1594_v6 = vadd.f32 %v2815_v58, %v1565_v27  ;;  %v1312_v8 = vmax.f32 %v2970_v7, %v1267_v50  ;;  %v2975_v27 = vmax.f32 %v2789_v5, %v2791_v15 }
 0x18a   : > { %v2180_v30 = vpop.f32.mrf.mxu0  ;;  %v2226_v31 = vpop.f32.mrf.mxu1 }
 0x18b   : > { %1726 = vst.msk [vmem:[%s2824_s11 + $0x30] sm:$0xf] %vm1713_vm4, %v1998_v52  ;;  %v1616_v34 = vmax.f32 %v1594_v6, 0.0  ;;  %v1566_v38 = vmax.f32 %v1312_v8, %v1521_v51  ;;  %v2976_v31 = vmax.f32 %v2795_v29, %v2797_v33 }
 0x18c   : > { %v1270_v32 = vpop.f32.mrf.mxu0  ;;  %v1524_v39 = vpop.f32.mrf.mxu1 }
 0x18d   : > { %v1999_v40 = vpack.c.bf16 %v1616_v34, %v1616_v34  ;;  %v1595_v41 = vadd.f32 %v2815_v58, %v1566_v38  ;;  %v1313_v11 = vmax.f32 %v2971_v55, %v1270_v32 }
 0x18e   : > { %v2181_v12 = vpop.f32.mrf.mxu0  ;;  %v2227_v56 = vpop.f32.mrf.mxu1 }
 0x18f   : > { %1727 = vst.msk [vmem:[%s2824_s11 + $0x34] sm:$0xf] %vm1713_vm4, %v1999_v40  ;;  %v1617_v48 = vmax.f32 %v1595_v41, 0.0  ;;  %v1567_v49 = vmax.f32 %v1313_v11, %v1524_v39  ;;  %v2977_v11 = vmax.f32 %v2803_v54, %v2805_v53 }
 0x190   : > { %v1275_v57 = vpop.f32.mrf.mxu0  ;;  %v1529_v42 = vpop.f32.mrf.mxu1 }
 0x191   : > { %v2000_v23 = vpack.c.bf16 %v1617_v48, %v1617_v48  ;;  %v1596_v28 = vadd.f32 %v2815_v58, %v1567_v49  ;;  %v1314_v18 = vmax.f32 %v2972_v0, %v1275_v57 }
 0x192   : > { %v2184_v35 = vpop.f32.mrf.mxu0  ;;  %v2230_v16 = vpop.f32.mrf.mxu1 }
 0x193   : > { %1728 = vst.msk [vmem:[%s2824_s11 + $0x38] sm:$0xf] %vm1713_vm4, %v2000_v23  ;;  %v1618_v59 = vmax.f32 %v1596_v28, 0.0  ;;  %v1568_v63 = vmax.f32 %v1314_v18, %v1529_v42 }
 0x194   : > { %v1278_v17 = vpop.f32.mrf.mxu0  ;;  %v1532_v60 = vpop.f32.mrf.mxu1 }
 0x195   : > { %v2001_v61 = vpack.c.bf16 %v1618_v59, %v1618_v59  ;;  %v1597_v62 = vadd.f32 %v2815_v58, %v1568_v63  ;;  %v1315_v45 = vmax.f32 %v2973_v36, %v1278_v17 }
 0x196   : > { %v2185_v46 = vpop.f32.mrf.mxu0  ;;  %v2231_v47 = vpop.f32.mrf.mxu1 }
 0x197   : > { %1729 = vst.msk [vmem:[%s2824_s11 + $0x3c] sm:$0xf] %vm1713_vm4, %v2001_v61  ;;  %v1619_v9 = vmax.f32 %v1597_v62, 0.0  ;;  %v1569_v10 = vmax.f32 %v1315_v45, %v1532_v60 }
 0x198   : > { %v1283_v37 = vpop.f32.mrf.mxu0  ;;  %v1537_v21 = vpop.f32.mrf.mxu1 }
 0x199   : > { %v2002_v22 = vpack.c.bf16 %v1619_v9, %v1619_v9  ;;  %v1598_v13 = vadd.f32 %v2815_v58, %v1569_v10  ;;  %v1316_v2 = vmax.f32 %v2974_v1, %v1283_v37 }
 0x19a   : > { %v2188_v3 = vpop.f32.mrf.mxu0  ;;  %v2234_v19 = vpop.f32.mrf.mxu1 }
 0x19b   : > { %1730 = vst.msk [vmem:[%s2824_s11 + $0x40] sm:$0xf] %vm1713_vm4, %v2002_v22  ;;  %v1620_v20 = vmax.f32 %v1598_v13, 0.0  ;;  %v1570_v24 = vmax.f32 %v1316_v2, %v1537_v21 }
 0x19c   : > { %v1286_v4 = vpop.f32.mrf.mxu0  ;;  %v1540_v14 = vpop.f32.mrf.mxu1 }
 0x19d   : > { %v2003_v25 = vpack.c.bf16 %v1620_v20, %v1620_v20  ;;  %v1599_v26 = vadd.f32 %v2815_v58, %v1570_v24  ;;  %v1317_v50 = vmax.f32 %v2975_v27, %v1286_v4 }
 0x19e   : > { %v2189_v51 = vpop.f32.mrf.mxu0  ;;  %v2235_v52 = vpop.f32.mrf.mxu1 }
 0x19f   : > { %1731 = vst.msk [vmem:[%s2824_s11 + $0x44] sm:$0xf] %vm1713_vm4, %v2003_v25  ;;  %v1621_v43 = vmax.f32 %v1599_v26, 0.0  ;;  %v1571_v44 = vmax.f32 %v1317_v50, %v1540_v14 }
 0x1a0   : > { %v1291_v6 = vpop.f32.mrf.mxu0  ;;  %v1545_v7 = vpop.f32.mrf.mxu1 }
 0x1a1   : > { %v2004_v8 = vpack.c.bf16 %v1621_v43, %v1621_v43  ;;  %v1600_v30 = vadd.f32 %v2815_v58, %v1571_v44  ;;  %v1318_v34 = vmax.f32 %v2976_v31, %v1291_v6 }
 0x1a2   : > { %v2192_v38 = vpop.f32.mrf.mxu0  ;;  %v2238_v32 = vpop.f32.mrf.mxu1 }
 0x1a3   : > { %1732 = vst.msk [vmem:[%s2824_s11 + $0x48] sm:$0xf] %vm1713_vm4, %v2004_v8  ;;  %v1622_v5 = vmax.f32 %v1600_v30, 0.0  ;;  %v1572_v15 = vmax.f32 %v1318_v34, %v1545_v7 }
 0x1a4   : > { %v1294_v39 = vpop.f32.mrf.mxu0  ;;  %v1548_v40 = vpop.f32.mrf.mxu1 }
 0x1a5   : > { %v2005_v41 = vpack.c.bf16 %v1622_v5, %v1622_v5  ;;  %v1601_v55 = vadd.f32 %v2815_v58, %v1572_v15  ;;  %v1319_v12 = vmax.f32 %v2977_v11, %v1294_v39 }
 0x1a6   : > { %v2193_v56 = vpop.f32.mrf.mxu0  ;;  %v2239_v29 = vpop.f32.mrf.mxu1 }
 0x1a7   : > { %1733 = vst.msk [vmem:[%s2824_s11 + $0x4c] sm:$0xf] %vm1713_vm4, %v2005_v41  ;;  %v1623_v33 = vmax.f32 %v1601_v55, 0.0  ;;  %v1573_v48 = vmax.f32 %v1319_v12, %v1548_v40 }
 0x1a9   : > { %v2006_v49 = vpack.c.bf16 %v1623_v33, %v1623_v33  ;;  %v1602_v57 = vadd.f32 %v2815_v58, %v1573_v48 }
 0x1ab   : > { %1734 = vst.msk [vmem:[%s2824_s11 + $0x50] sm:$0xf] %vm1713_vm4, %v2006_v49  ;;  %v1624_v42 = vmax.f32 %v1602_v57, 0.0 }
 0x1ad   : > { %v2007_v23 = vpack.c.bf16 %v1624_v42, %v1624_v42 }
 0x1af   : > { %1735 = vst.msk [vmem:[%s2824_s11 + $0x54] sm:$0xf] %vm1713_vm4, %v2007_v23 }
 0x1b0 PF: > { %p10_p9 = scmp.ge.s32.totalorder %s2378_s16, 4   ;;  %s2978_s12 = smov %s2332_s13 }
 0x1b1   : > { %s2979_s13 = smov %s2387_s19  ;;  %s2980_s14 = smov %s2378_s16 }
 0x1b2   :  { %12 = sbr.rel (!%p10_p9) target bundleno = 2 (0x2), region = 111 }

// kernel: simple_cnn_forward.4
= control target key start
LH: loop header
LB: loop body
LE: loop exit
PB: predicated region body
PF: predicated region fallthrough
CT: control target
= control target key end

     0   :  { %s1505_s12 = smov 0   ;;  %s1507_s13 = smov 0   ;;  %s1845_s0 = inlined_call_operand.vmem [shape: bf16[4,64,288], index: 0, kind: input, shape index: {}]   ;;  %s1846_s1 = inlined_call_operand.vmem [shape: bf16[288,64], index: 1, kind: input, shape index: {}]   ;;  %s1847_s2 = inlined_call_operand.vmem [shape: f32[1,64], index: 2, kind: input, shape index: {}]   ;;  %s1848_s3 = inlined_call_operand.vmem [shape: bf16[64,64], index: 3, kind: output, shape index: {}]  }
   0x1   :  { %s1509_s14 = smov 0  }
   0x2 LB: > { %s1097_s15 = sadd.s32 4294967295, %s1483_s14   ;;  %s1522_s16 = sadd.s32 1, %s1483_s14   ;;  %s1483_s14 = sphi %s1509_s14, %s1851_s14   ;;  %s1479_s13 = sphi %s1507_s13, %s1850_s13   ;;  %s1475_s12 = sphi %s1505_s12, %s1849_s12  }
   0x3   : > { %s17_s17 = ssub.s32 %s1483_s14, %s1522_s16  ;;  %s20_s18 = sadd.s32 1, %s1479_s13 }
   0x4   : > { %p18_p0 = scmp.eq.s32.totalorder %s17_s17, 0  ;;  %p27_p1 = scmp.ne.s32.totalorder %s1479_s13, %s1475_s12 }
   0x5   : > { %p28_p2 = scmp.eq.s32.totalorder %s1483_s14, 0  ;;  %p1100_p4 = scmp.ge.s32.totalorder %s1483_s14, 2 }
   0x6   : > { %s1531_s19 = scalar_select %p18_p0, %s1479_s13, %s20_s18  }
   0x7   : > { %p29_p3 = por %p28_p2, %p27_p1  ;;  %127 = sbr.rel (%p1100_p4) target bundleno = 35 (0x23), region = 24 }
   0xc   : > { %130 = sbr.rel (!%p29_p3) target bundleno = 35 (0x23), region = 28  ;;  %s132_s20 = sand.u32 (%p29_p3), 1, %s1479_s13  }
   0xd   : > { %s1385_s21 = smul.u32 (%p29_p3), 48, %s1483_s14 }
   0xe   : > { %s1384_s22 = smul.u32 (%p29_p3), 192, %s132_s20 }
   0xf   : > { %s1539_s25 = scalar_lea.vmem (%p29_p3), %s1845_s0, %s1385_s21 }
  0x10   : > { %v153_v0 = vld [vmem:[%s1539_s25] sm:$0xff] (%p29_p3)  ;;  %v155_v1 = vld [vmem:[%s1539_s25 + $0xc] sm:$0xff] (%p29_p3)  ;;  %v157_v2 = vld [vmem:[%s1539_s25 + $0x18] sm:$0xff] (%p29_p3)  ;;  %s1544_s26 = scalar_lea.vmem (%p29_p3), [#allocation2], %s1384_s22 }
  0x11   : > { %154 = vst [vmem:[%s1544_s26] sm:$0xff] %v153_v0  ;;  %156 = vst [vmem:[%s1544_s26 + $0xc] sm:$0xff] %v155_v1  ;;  %v159_v3 = vld [vmem:[%s1539_s25 + $0x24] sm:$0xff]  ;;  %v163_v5 = vld [vmem:[%s1539_s25 + $0x6c] sm:$0xff] }
  0x12   : > { %158 = vst [vmem:[%s1544_s26 + $0x18] sm:$0xff] %v157_v2  ;;  %v161_v4 = vld [vmem:[%s1539_s25 + $0x60] sm:$0xff]  ;;  %160 = vst [vmem:[%s1544_s26 + $0x24] sm:$0xff] %v159_v3  ;;  %v165_v6 = vld [vmem:[%s1539_s25 + $0x78] sm:$0xff] }
  0x13   : > { %162 = vst [vmem:[%s1544_s26 + $0x30] sm:$0xff] %v161_v4  ;;  %164 = vst [vmem:[%s1544_s26 + $0x3c] sm:$0xff] %v163_v5  ;;  %v167_v7 = vld [vmem:[%s1539_s25 + $0x84] sm:$0xff]  ;;  %v171_v9 = vld [vmem:[%s1539_s25 + $0xcc] sm:$0xff] }
  0x14   : > { %v169_v8 = vld [vmem:[%s1539_s25 + $0xc0] sm:$0xff]  ;;  %166 = vst [vmem:[%s1544_s26 + $0x48] sm:$0xff] %v165_v6  ;;  %168 = vst [vmem:[%s1544_s26 + $0x54] sm:$0xff] %v167_v7  ;;  %v173_v10 = vld [vmem:[%s1539_s25 + $0xd8] sm:$0xff] }
  0x15   : > { %170 = vst [vmem:[%s1544_s26 + $0x60] sm:$0xff] %v169_v8  ;;  %v175_v11 = vld [vmem:[%s1539_s25 + $0xe4] sm:$0xff]  ;;  %172 = vst [vmem:[%s1544_s26 + $0x6c] sm:$0xff] %v171_v9  ;;  %v179_v13 = vld [vmem:[%s1539_s25 + $0x12c] sm:$0xff] }
  0x16   : > { %174 = vst [vmem:[%s1544_s26 + $0x78] sm:$0xff] %v173_v10  ;;  %176 = vst [vmem:[%s1544_s26 + $0x84] sm:$0xff] %v175_v11  ;;  %v177_v12 = vld [vmem:[%s1539_s25 + $0x120] sm:$0xff]  ;;  %v181_v14 = vld [vmem:[%s1539_s25 + $0x138] sm:$0xff] }
  0x17   : > { %178 = vst [vmem:[%s1544_s26 + $0x90] sm:$0xff] %v177_v12  ;;  %180 = vst [vmem:[%s1544_s26 + $0x9c] sm:$0xff] %v179_v13  ;;  %v183_v15 = vld [vmem:[%s1539_s25 + $0x144] sm:$0xff]  ;;  %v1106_v17 = vld [vmem:[%s1539_s25 + $0x14] sm:$0xf] }
  0x18   : > { %182 = vst [vmem:[%s1544_s26 + $0xa8] sm:$0xff] %v181_v14  ;;  %v1104_v16 = vld [vmem:[%s1539_s25 + $0x8] sm:$0xf]  ;;  %184 = vst [vmem:[%s1544_s26 + $0xb4] sm:$0xff] %v183_v15  ;;  %v1108_v18 = vld [vmem:[%s1539_s25 + $0x20] sm:$0xf] }
  0x19   : > { %1105 = vst [vmem:[%s1544_s26 + $0x8] sm:$0xf] %v1104_v16  ;;  %1107 = vst [vmem:[%s1544_s26 + $0x14] sm:$0xf] %v1106_v17  ;;  %v1110_v19 = vld [vmem:[%s1539_s25 + $0x2c] sm:$0xf] }
  0x1a   : > { %v1112_v20 = vld [vmem:[%s1539_s25 + $0x68] sm:$0xf]  ;;  %1109 = vst [vmem:[%s1544_s26 + $0x20] sm:$0xf] %v1108_v18  ;;  %1111 = vst [vmem:[%s1544_s26 + $0x2c] sm:$0xf] %v1110_v19 }
  0x1b   : > { %1113 = vst [vmem:[%s1544_s26 + $0x38] sm:$0xf] %v1112_v20  ;;  %v1114_v21 = vld [vmem:[%s1539_s25 + $0x74] sm:$0xf]  ;;  %v1116_v22 = vld [vmem:[%s1539_s25 + $0x80] sm:$0xf] }
  0x1c   : > { %v1118_v23 = vld [vmem:[%s1539_s25 + $0x8c] sm:$0xf]  ;;  %1115 = vst [vmem:[%s1544_s26 + $0x44] sm:$0xf] %v1114_v21  ;;  %1117 = vst [vmem:[%s1544_s26 + $0x50] sm:$0xf] %v1116_v22 }
  0x1d   : > { %1119 = vst [vmem:[%s1544_s26 + $0x5c] sm:$0xf] %v1118_v23  ;;  %v1120_v24 = vld [vmem:[%s1539_s25 + $0xc8] sm:$0xf]  ;;  %v1122_v25 = vld [vmem:[%s1539_s25 + $0xd4] sm:$0xf] }
  0x1e   : > { %v1124_v26 = vld [vmem:[%s1539_s25 + $0xe0] sm:$0xf]  ;;  %1121 = vst [vmem:[%s1544_s26 + $0x68] sm:$0xf] %v1120_v24  ;;  %1123 = vst [vmem:[%s1544_s26 + $0x74] sm:$0xf] %v1122_v25 }
  0x1f   : > { %1125 = vst [vmem:[%s1544_s26 + $0x80] sm:$0xf] %v1124_v26  ;;  %v1126_v27 = vld [vmem:[%s1539_s25 + $0xec] sm:$0xf]  ;;  %v1128_v28 = vld [vmem:[%s1539_s25 + $0x128] sm:$0xf] }
  0x20   : > { %v1130_v29 = vld [vmem:[%s1539_s25 + $0x134] sm:$0xf]  ;;  %1127 = vst [vmem:[%s1544_s26 + $0x8c] sm:$0xf] %v1126_v27  ;;  %1129 = vst [vmem:[%s1544_s26 + $0x98] sm:$0xf] %v1128_v28 }
  0x21   : > { %1131 = vst [vmem:[%s1544_s26 + $0xa4] sm:$0xf] %v1130_v29  ;;  %v1132_v30 = vld [vmem:[%s1539_s25 + $0x140] sm:$0xf]  ;;  %v1134_v31 = vld [vmem:[%s1539_s25 + $0x14c] sm:$0xf] }
  0x22   : > { %1133 = vst [vmem:[%s1544_s26 + $0xb0] sm:$0xf] %v1132_v30  ;;  %1135 = vst [vmem:[%s1544_s26 + $0xbc] sm:$0xf] %v1134_v31 }
  0x23 PF: > { %p1136_p5 = scmp.ge.s32.totalorder %s1483_s14, 1  ;;  %p229_p6 = scmp.lt.s32.totalorder %s1483_s14, 3 }
  0x25   : > { %p230_p7 = pnand %p1136_p5, %p229_p6 }
  0x26   : > { %s236_s29 = sand.u32 (!%p230_p7), 1, %s1475_s12  }
  0x27   : > { %233 = sbr.rel (%p230_p7) target bundleno = 353 (0x161), region = 54 }
  0x28   : > { %s1386_s5 = smul.u32 (!%p230_p7), 192, %s236_s29 }
  0x2a   : > { %s1651_s21 = scalar_lea.vmem (!%p230_p7), [#allocation2], %s1386_s5 }
  0x2c   : > { %v1612_v32 = vld [vmem:[%s1846_s1 + $0x78] sm:$0xff]   ;;  %v1618_v33 = vld [vmem:[%s1846_s1 + $0x88] sm:$0xff]   ;;  %v1630_v35 = vld [vmem:[%s1846_s1 + $0x70] sm:$0xff]   ;;  %vm449_vm0 = vcmask 261120   ;;  %vm1026_vm1 = vcmask 519168  }
  0x2d   : > { %1224 = vmatprep.subr.bf16.mxu0 %v1612_v32  ;;  %v1624_v34 = vld [vmem:[%s1846_s1 + $0x38] sm:$0xff]   ;;  %1352 = vmatprep.subr.bf16.mxu1 %v1618_v33  ;;  %v1637_v36 = vld [vmem:[%s1846_s1 + $0x80] sm:$0xff]   ;;  %v1643_v37 = vld [vmem:[%s1846_s1 + $0x30] sm:$0xff]  }
  0x2e   : > { %1225 = vmatpush3.bf16.msra.mxu0 %v1624_v34  ;;  %1353 = vmatpush3.bf16.msra.mxu1 %v1618_v33  ;;  %v1649_v38 = vld [vmem:[%s1846_s1 + $0x68] sm:$0xff]   ;;  %v1668_v42 = vld [vmem:[%s1846_s1 + $0x60] sm:$0xff]   ;;  %v1683_v44 = vld [vmem:[%s1846_s1 + $0x58] sm:$0xff]  }
  0x2f   : > { %1226 = vmatprep.subr.bf16.mxu0 %v1630_v35  ;;  %1354 = vmatprep.subr.bf16.mxu1 %v1637_v36  ;;  %v1418_v39 = vld [vmem:[%s1651_s21 + $0x8] ss:$12 sps:$4 sm:$0xff]   ;;  %v1420_v41 = vld [vmem:[%s1651_s21 + $0x20] ss:$12 sps:$4 sm:$0xff]   ;;  %v1690_v45 = vld [vmem:[%s1846_s1 + $0x18] sm:$0xff]  }
  0x30   : > { %v1659_v40 = vld [vmem:[%s1846_s1 + $0x28] sm:$0xff]   ;;  %1356 = vmatprep.mubr.msk.bf16.mxu1 %vm449_vm0, %v1418_v39  ;;  %v1676_v43 = vld [vmem:[%s1846_s1 + $0x20] sm:$0xff]   ;;  %v1697_v46 = vld [vmem:[%s1846_s1 + $0x50] sm:$0xff]  }
  0x31   : > { %v1702_v47 = vld [vmem:[%s1846_s1 + $0x10] sm:$0xff]   ;;  %v1709_v48 = vld [vmem:[%s1846_s1 + $0x48] sm:$0xff]   ;;  %v1727_v52 = vld [vmem:[%s1846_s1 + $0x40] sm:$0xff]  }
  0x32   : > { %1227 = vmatpush3.bf16.msra.mxu0 %v1643_v37  ;;  %1355 = vmatpush3.bf16.msra.mxu1 %v1637_v36  ;;  %v1433_v49 = vld [vmem:[%s1651_s21 + $0x4] ss:$12 sps:$4 sm:$0xff]   ;;  %v1438_v50 = vld [vmem:[%s1651_s21 + $0x34] ss:$12 sps:$4 sm:$0xff]   ;;  %v1720_v51 = vld [vmem:[%s1846_s1 + $0x8] sm:$0xff]  }
  0x33   : > { %1228 = vmatprep.subr.bf16.mxu0 %v1649_v38  ;;  %1256 = vmatprep.subr.bf16.mxu1 %v1612_v32  ;;  %v1734_v53 = vld [vmem:[%s1846_s1] sm:$0xff]   ;;  %v1434_v55 = vld [vmem:[%s1651_s21 + $0x1c] ss:$12 sps:$4 sm:$0xff]   ;;  %v1440_v58 = vld [vmem:[%s1651_s21 + $0x4c] ss:$12 sps:$4 sm:$0xff]  }
  0x34   : > { %488 = vmatprep.mubr.bf16.mxu0 %v1433_v49  ;;  %v1431_v54 = vld [vmem:[%s1651_s21] ss:$12 sps:$4 sm:$0xff]   ;;  %v1436_v56 = vld [vmem:[%s1651_s21 + $0x30] ss:$12 sps:$4 sm:$0xff]   ;;  %v1439_v57 = vld [vmem:[%s1651_s21 + $0x18] ss:$12 sps:$4 sm:$0xff]  }
  0x35   : > { %1357 = vmatmul.mubr.msk.bf16.vlgmr.msra.gmra.mxu1 %vm449_vm0, %v1420_v41  ;;  %v1442_v59 = vld [vmem:[%s1651_s21 + $0x38] ss:$12 sps:$4 sm:$0xff]   ;;  %v1443_v60 = vld [vmem:[%s1651_s21 + $0x48] ss:$12 sps:$4 sm:$0xff]   ;;  %v1444_v61 = vld [vmem:[%s1651_s21 + $0x50] ss:$12 sps:$4 sm:$0xff]  }
  0x36   : > { %1229 = vmatpush3.bf16.msra.mxu0 %v1659_v40  ;;  %1257 = vmatpush3.bf16.msra.mxu1 %v1624_v34  ;;  %v1445_v62 = vld [vmem:[%s1651_s21 + $0x68] ss:$12 sps:$4 sm:$0xff]   ;;  %v1449_v63 = vld [vmem:[%s1651_s21 + $0x64] ss:$12 sps:$4 sm:$0xff]   ;;  %v1446_v0 = vld [vmem:[%s1651_s21 + $0x80] ss:$12 sps:$4 sm:$0xff]  }
  0x37   : > { %1230 = vmatprep.subr.bf16.mxu0 %v1668_v42  ;;  %1258 = vmatprep.subr.bf16.mxu1 %v1630_v35  ;;  %v1455_v1 = vld [vmem:[%s1651_s21 + $0x94] ss:$12 sps:$4 sm:$0xff]   ;;  %v1450_v3 = vld [vmem:[%s1651_s21 + $0x7c] ss:$12 sps:$4 sm:$0xff]   ;;  %v1452_v4 = vld [vmem:[%s1651_s21 + $0x78] ss:$12 sps:$4 sm:$0xff]  }
  0x38   : > { %631 = vmatprep.mubr.bf16.mxu1 %v1438_v50  ;;  %v1447_v2 = vld [vmem:[%s1651_s21 + $0x60] ss:$12 sps:$4 sm:$0xff]   ;;  %v1456_v5 = vld [vmem:[%s1651_s21 + $0x98] ss:$12 sps:$4 sm:$0xff]   ;;  %v1453_v6 = vld [vmem:[%s1651_s21 + $0x90] ss:$12 sps:$4 sm:$0xff]  }
  0x39   : > { %v1457_v7 = vld [vmem:[%s1651_s21 + $0xb0] ss:$12 sps:$4 sm:$0xff]   ;;  %v1458_v8 = vld [vmem:[%s1651_s21 + $0xac] ss:$12 sps:$4 sm:$0xff]   ;;  %v1460_v9 = vld [vmem:[%s1651_s21 + $0xa8] ss:$12 sps:$4 sm:$0xff]  }
  0x3a   : > { %1231 = vmatpush3.bf16.msra.mxu0 %v1676_v43  ;;  %1259 = vmatpush3.bf16.msra.mxu1 %v1643_v37  ;;  %s1137_s21 = sshll.u32 %s1097_s15, 2 }
  0x3b   : > { %1232 = vmatprep.subr.bf16.mxu0 %v1683_v44  ;;  %1260 = vmatprep.subr.bf16.mxu1 %v1649_v38  ;;  %p261_p8 = scmp.lt.s32.totalorder %s1137_s21, 7 }
  0x3d   : > { %s1853_s21 = smov (!%p261_p8, %s1137_s21), 7 }
  0x3e   : > { %1233 = vmatpush3.bf16.msra.mxu0 %v1690_v45  ;;  %1261 = vmatpush3.bf16.msra.mxu1 %v1659_v40  ;;  %s1138_s23 = sshll.u32 %s1853_s21, 2 }
  0x3f   : > { %1234 = vmatprep.subr.bf16.mxu0 %v1697_v46  ;;  %1262 = vmatprep.subr.bf16.mxu1 %v1668_v42  ;;  %s264_s26 = scalar_lea.vmem %s1848_s3, %s1138_s23 }
  0x42   : > { %1235 = vmatpush3.bf16.msra.mxu0 %v1702_v47  ;;  %1263 = vmatpush3.bf16.msra.mxu1 %v1676_v43 }
  0x43   : > { %1236 = vmatprep.subr.bf16.mxu0 %v1709_v48  ;;  %1264 = vmatprep.subr.bf16.mxu1 %v1683_v44 }
  0x46   : > { %1237 = vmatpush3.bf16.msra.mxu0 %v1720_v51  ;;  %1265 = vmatpush3.bf16.msra.mxu1 %v1690_v45 }
  0x47   : > { %1238 = vmatprep.subr.bf16.mxu0 %v1727_v52  ;;  %1266 = vmatprep.subr.bf16.mxu1 %v1697_v46 }
  0x4a   : > { %1239 = vmatpush3.bf16.msra.mxu0 %v1734_v53  ;;  %1267 = vmatpush3.bf16.msra.mxu1 %v1702_v47 }
  0x4b   : > { %1268 = vmatprep.subr.bf16.mxu1 %v1709_v48  ;;  %1360 = vmatprep.subr.bf16.mxu0 %v1618_v33 }
  0x4d   : > { %489 = vmatmul.mubr.bf16.vlgmr.msra.gmra.mxu0 %v1431_v54 }
  0x4e   : > { %1269 = vmatpush3.bf16.msra.mxu1 %v1720_v51  ;;  %1361 = vmatpush3.bf16.msra.mxu0 %v1618_v33 }
  0x4f   : > { %1270 = vmatprep.subr.bf16.mxu1 %v1727_v52  ;;  %496 = vmatprep.mubr.bf16.mxu0 %v1434_v55 }
  0x50   : > { %1362 = vmatprep.subr.bf16.mxu0 %v1637_v36 }
  0x52   : > { %1271 = vmatpush3.bf16.msra.mxu1 %v1734_v53  ;;  %1363 = vmatpush3.bf16.msra.mxu0 %v1637_v36 }
  0x53   : > { %1288 = vmatprep.subr.bf16.mxu1 %v1612_v32  ;;  %1368 = vmatprep.subr.bf16.mxu0 %v1618_v33 }
  0x55   : > { %497 = vmatmul.mubr.bf16.gmra.mxu0 %v1439_v57  ;;  %632 = vmatmul.mubr.bf16.vlgmr.msra.gmra.mxu1 %v1436_v56 }
  0x56   : > { %1289 = vmatpush3.bf16.msra.mxu1 %v1624_v34  ;;  %639 = vmatprep.mubr.bf16.mxu1 %v1440_v58 }
  0x57   : > { %1290 = vmatprep.subr.bf16.mxu1 %v1630_v35  ;;  %1364 = vmatprep.mubr.msk.bf16.mxu0 %vm449_vm0, %v1442_v59 }
  0x5a   : > { %1291 = vmatpush3.bf16.msra.mxu1 %v1643_v37 }
  0x5b   : > { %1292 = vmatprep.subr.bf16.mxu1 %v1649_v38 }
  0x5d   : > { %640 = vmatmul.mubr.bf16.gmra.mxu1 %v1443_v60  ;;  %1365 = vmatmul.mubr.msk.bf16.vlgmr.msra.gmra.mxu0 %vm449_vm0, %v1444_v61 }
  0x5e   : > { %1369 = vmatpush3.bf16.msra.mxu0 %v1618_v33  ;;  %1293 = vmatpush3.bf16.msra.mxu1 %v1659_v40 }
  0x5f   : > { %1370 = vmatprep.subr.bf16.mxu0 %v1637_v36  ;;  %1294 = vmatprep.subr.bf16.mxu1 %v1668_v42 }
  0x60   : > { %1372 = vmatprep.mubr.msk.bf16.mxu0 %vm449_vm0, %v1445_v62  ;;  %778 = vmatprep.mubr.bf16.mxu1 %v1449_v63 }
  0x62   : > { %1371 = vmatpush3.bf16.msra.mxu0 %v1637_v36  ;;  %1295 = vmatpush3.bf16.msra.mxu1 %v1676_v43 }
  0x63   : > { %1320 = vmatprep.subr.bf16.mxu0 %v1612_v32  ;;  %1296 = vmatprep.subr.bf16.mxu1 %v1683_v44 }
  0x65   : > { %1373 = vmatmul.mubr.msk.bf16.vlgmr.msra.gmra.mxu0 %vm449_vm0, %v1446_v0 }
  0x66   : > { %1321 = vmatpush3.bf16.msra.mxu0 %v1624_v34  ;;  %1297 = vmatpush3.bf16.msra.mxu1 %v1690_v45 }
  0x67   : > { %1322 = vmatprep.subr.bf16.mxu0 %v1630_v35  ;;  %1298 = vmatprep.subr.bf16.mxu1 %v1697_v46 }
  0x68   : > { %925 = vmatprep.mubr.bf16.mxu0 %v1455_v1 }
  0x6a   : > { %1323 = vmatpush3.bf16.msra.mxu0 %v1643_v37  ;;  %1299 = vmatpush3.bf16.msra.mxu1 %v1702_v47 }
  0x6b   : > { %1324 = vmatprep.subr.bf16.mxu0 %v1649_v38  ;;  %1300 = vmatprep.subr.bf16.mxu1 %v1709_v48 }
  0x6e   : > { %1325 = vmatpush3.bf16.msra.mxu0 %v1659_v40  ;;  %1301 = vmatpush3.bf16.msra.mxu1 %v1720_v51 }
  0x6f   : > { %1326 = vmatprep.subr.bf16.mxu0 %v1668_v42  ;;  %1302 = vmatprep.subr.bf16.mxu1 %v1727_v52 }
  0x72   : > { %1327 = vmatpush3.bf16.msra.mxu0 %v1676_v43  ;;  %1303 = vmatpush3.bf16.msra.mxu1 %v1734_v53 }
  0x73   : > { %1328 = vmatprep.subr.bf16.mxu0 %v1683_v44  ;;  %1376 = vmatprep.subr.bf16.mxu1 %v1618_v33 }
  0x75   : > { %779 = vmatmul.mubr.bf16.vlgmr.msra.gmra.mxu1 %v1447_v2 }
  0x76   : > { %1329 = vmatpush3.bf16.msra.mxu0 %v1690_v45  ;;  %786 = vmatprep.mubr.bf16.mxu1 %v1450_v3 }
  0x77   : > { %1330 = vmatprep.subr.bf16.mxu0 %v1697_v46  ;;  %1377 = vmatpush3.bf16.msra.mxu1 %v1618_v33 }
  0x78   : > { %1378 = vmatprep.subr.bf16.mxu1 %v1637_v36 }
  0x7a   : > { %1331 = vmatpush3.bf16.msra.mxu0 %v1702_v47 }
  0x7b   : > { %1332 = vmatprep.subr.bf16.mxu0 %v1709_v48  ;;  %1379 = vmatpush3.bf16.msra.mxu1 %v1637_v36 }
  0x7d   : > { %787 = vmatmul.mubr.bf16.gmra.mxu1 %v1452_v4 }
  0x7e   : > { %1333 = vmatpush3.bf16.msra.mxu0 %v1720_v51  ;;  %1380 = vmatprep.mubr.msk.bf16.mxu1 %vm449_vm0, %v1456_v5 }
  0x7f   : > { %1334 = vmatprep.subr.bf16.mxu0 %v1727_v52 }
  0x82   : > { %1335 = vmatpush3.bf16.msra.mxu0 %v1734_v53 }
  0x85   : > { %926 = vmatmul.mubr.bf16.vlgmr.msra.gmra.mxu0 %v1453_v6  ;;  %1381 = vmatmul.mubr.msk.bf16.vlgmr.msra.gmra.mxu1 %vm449_vm0, %v1457_v7 }
  0x86   : > { %933 = vmatprep.mubr.bf16.mxu0 %v1458_v8  ;;  %v1213_v8 = vld [vmem:[%s1847_s2] ss:$0 sm:$0xff] }
  0x8d   : > { %934 = vmatmul.mubr.bf16.gmra.mxu0 %v1460_v9 }
  0xf5   : > { %v1814_v10 = vpop.f32.mrf.mxu1 }
  0xf7   : > { %v539_v11 = vpop.f32.mrf.mxu1 }
  0xf9   : > { %v1816_v14 = vpop.f32.mrf.mxu1 }
  0xfb   : > { %v542_v17 = vpop.f32.mrf.mxu1 }
 0x10d   : > { %v1240_v12 = vpop.f32.mrf.mxu0 }
 0x10f   : > { %v1241_v13 = vpop.f32.mrf.mxu0 }
 0x110   : > { %v1242_v44 = vadd.f32 %v1241_v13, %v1240_v12 }
 0x111   : > { %v1243_v15 = vpop.f32.mrf.mxu0 }
 0x112   : > { %v540_v50 = vadd.f32 %v1242_v44, %v539_v11 }
 0x113   : > { %v1244_v16 = vpop.f32.mrf.mxu0 }
 0x114   : > { %v1245_v53 = vadd.f32 %v1244_v16, %v1243_v15 }
 0x115   : > { %v1246_v18 = vpop.f32.mrf.mxu0  ;;  %v1272_v19 = vpop.f32.mrf.mxu1 }
 0x116   : > { %v543_v3 = vadd.f32 %v1245_v53, %v542_v17 }
 0x117   : > { %v1247_v20 = vpop.f32.mrf.mxu0  ;;  %v1273_v21 = vpop.f32.mrf.mxu1 }
 0x118   : > { %v1274_v43 = vadd.f32 %v1273_v21, %v1272_v19  ;;  %v1248_v63 = vadd.f32 %v1247_v20, %v1246_v18 }
 0x119   : > { %v1249_v22 = vpop.f32.mrf.mxu0  ;;  %v1275_v23 = vpop.f32.mrf.mxu1 }
 0x11a   : > { %v548_v18 = vadd.f32 %v1814_v10, %v1248_v63 }
 0x11b   : > { %v1250_v24 = vpop.f32.mrf.mxu0  ;;  %v1276_v25 = vpop.f32.mrf.mxu1 }
 0x11c   : > { %v1277_v54 = vadd.f32 %v1276_v25, %v1275_v23  ;;  %v1251_v17 = vadd.f32 %v1250_v24, %v1249_v22 }
 0x11d   : > { %v1278_v26 = vpop.f32.mrf.mxu1  ;;  %v1366_v27 = vpop.f32.mrf.mxu0 }
 0x11f   : > { %v1279_v28 = vpop.f32.mrf.mxu1  ;;  %v682_v29 = vpop.f32.mrf.mxu0 }
 0x120   : > { %v683_v49 = vadd.f32 %v1274_v43, %v682_v29  ;;  %v1280_v57 = vadd.f32 %v1279_v28, %v1278_v26 }
 0x121   : > { %v1281_v30 = vpop.f32.mrf.mxu1  ;;  %v1367_v31 = vpop.f32.mrf.mxu0 }
 0x122   : > { %v697_v60 = vmax.f32 %v540_v50, %v683_v49  ;;  %v691_v7 = vadd.f32 %v1366_v27, %v1280_v57 }
 0x123   : > { %v1282_v32 = vpop.f32.mrf.mxu1  ;;  %v685_v33 = vpop.f32.mrf.mxu0 }
 0x124   : > { %v686_v61 = vadd.f32 %v1277_v54, %v685_v33  ;;  %v1283_v12 = vadd.f32 %v1282_v32, %v1281_v30  ;;  %v699_v27 = vmax.f32 %v548_v18, %v691_v7  ;;  %v551_v30 = vadd.f32 %v1816_v14, %v1251_v17 }
 0x125   : > { %v1374_v35 = vpop.f32.mrf.mxu0 }
 0x126   : > { %v698_v13 = vmax.f32 %v543_v3, %v686_v61  ;;  %v694_v29 = vadd.f32 %v1367_v31, %v1283_v12 }
 0x127   : > { %v829_v38 = vpop.f32.mrf.mxu0 }
 0x129   : > { %v1375_v41 = vpop.f32.mrf.mxu0 }
 0x12b   : > { %v832_v47 = vpop.f32.mrf.mxu0 }
 0x135   : > { %v1304_v34 = vpop.f32.mrf.mxu1 }
 0x137   : > { %v1305_v36 = vpop.f32.mrf.mxu1 }
 0x138   : > { %v1306_v46 = vadd.f32 %v1305_v36, %v1304_v34 }
 0x139   : > { %v1307_v37 = vpop.f32.mrf.mxu1 }
 0x13a   : > { %v830_v55 = vadd.f32 %v1306_v46, %v829_v38 }
 0x13b   : > { %v1308_v39 = vpop.f32.mrf.mxu1 }
 0x13c   : > { %v1309_v56 = vadd.f32 %v1308_v39, %v1307_v37  ;;  %v844_v5 = vmax.f32 %v697_v60, %v830_v55  ;;  %v700_v39 = vmax.f32 %v551_v30, %v694_v29 }
 0x13d   : > { %v1310_v40 = vpop.f32.mrf.mxu1 }
 0x13e   : > { %v833_v4 = vadd.f32 %v1309_v56, %v832_v47 }
 0x13f   : > { %v1311_v42 = vpop.f32.mrf.mxu1 }
 0x140   : > { %v1312_v0 = vadd.f32 %v1311_v42, %v1310_v40  ;;  %v845_v25 = vmax.f32 %v698_v13, %v833_v4 }
 0x141   : > { %v1313_v45 = vpop.f32.mrf.mxu1 }
 0x142   : > { %v838_v19 = vadd.f32 %v1374_v35, %v1312_v0 }
 0x143   : > { %v1314_v48 = vpop.f32.mrf.mxu1 }
 0x144   : > { %v1315_v21 = vadd.f32 %v1314_v48, %v1313_v45  ;;  %v846_v32 = vmax.f32 %v699_v27, %v838_v19 }
 0x145   : > { %v1336_v51 = vpop.f32.mrf.mxu0  ;;  %v1382_v52 = vpop.f32.mrf.mxu1 }
 0x146   : > { %v841_v22 = vadd.f32 %v1375_v41, %v1315_v21 }
 0x147   : > { %v1337_v58 = vpop.f32.mrf.mxu0  ;;  %v976_v59 = vpop.f32.mrf.mxu1 }
 0x148   : > { %v1338_v62 = vadd.f32 %v1337_v58, %v1336_v51  ;;  %v847_v43 = vmax.f32 %v700_v39, %v841_v22 }
 0x149   : > { %v1339_v1 = vpop.f32.mrf.mxu0  ;;  %v1383_v2 = vpop.f32.mrf.mxu1 }
 0x14a   : > { %v977_v6 = vadd.f32 %v1338_v62, %v976_v59 }
 0x14b   : > { %v1340_v9 = vpop.f32.mrf.mxu0  ;;  %v979_v11 = vpop.f32.mrf.mxu1 }
 0x14c   : > { %v991_v15 = vmax.f32 %v844_v5, %v977_v6  ;;  %v1341_v16 = vadd.f32 %v1340_v9, %v1339_v1 }
 0x14d   : > { %v1342_v20 = vpop.f32.mrf.mxu0 }
 0x14e   : > { %v1002_v23 = vadd.f32 %v1213_v8, %v991_v15  ;;  %v980_v26 = vadd.f32 %v1341_v16, %v979_v11 }
 0x14f   : > { %v1343_v28 = vpop.f32.mrf.mxu0 }
 0x150   : > { %v1006_v33 = vmax.f32 %v1002_v23, 0.0  ;;  %v992_v34 = vmax.f32 %v845_v25, %v980_v26  ;;  %v1344_v36 = vadd.f32 %v1343_v28, %v1342_v20 }
 0x151   : > { %v1345_v10 = vpop.f32.mrf.mxu0 }
 0x152   : > { %v1220_v24 = vpack.c.bf16 %v1006_v33, %v1006_v33  ;;  %v1003_v35 = vadd.f32 %v1213_v8, %v992_v34  ;;  %v985_v37 = vadd.f32 %v1382_v52, %v1344_v36 }
 0x153   : > { %v1346_v38 = vpop.f32.mrf.mxu0 }
 0x154   : > { %1027 = vst.msk [vmem:[%s264_s26] sm:$0xf] %vm1026_vm1, %v1220_v24  ;;  %v1007_v31 = vmax.f32 %v1003_v35, 0.0  ;;  %v993_v40 = vmax.f32 %v846_v32, %v985_v37  ;;  %v1347_v42 = vadd.f32 %v1346_v38, %v1345_v10 }
 0x156   : > { %v1221_v14 = vpack.c.bf16 %v1007_v31, %v1007_v31  ;;  %v1004_v44 = vadd.f32 %v1213_v8, %v993_v40  ;;  %v988_v45 = vadd.f32 %v1383_v2, %v1347_v42 }
 0x158   : > { %1028 = vst.msk [vmem:[%s264_s26 + $0x4] sm:$0xf] %vm1026_vm1, %v1221_v14  ;;  %v1008_v46 = vmax.f32 %v1004_v44, 0.0  ;;  %v994_v47 = vmax.f32 %v847_v43, %v988_v45 }
 0x15a   : > { %v1222_v48 = vpack.c.bf16 %v1008_v46, %v1008_v46  ;;  %v1005_v41 = vadd.f32 %v1213_v8, %v994_v47 }
 0x15c   : > { %1029 = vst.msk [vmem:[%s264_s26 + $0x8] sm:$0xf] %vm1026_vm1, %v1222_v48  ;;  %v1009_v49 = vmax.f32 %v1005_v41, 0.0 }
 0x15e   : > { %v1223_v50 = vpack.c.bf16 %v1009_v49, %v1009_v49 }
 0x160   : > { %1030 = vst.msk [vmem:[%s264_s26 + $0xc] sm:$0xf] %vm1026_vm1, %v1223_v50 }
 0x161 PF: > { %p10_p9 = scmp.ge.s32.totalorder %s1522_s16, 4   ;;  %s1849_s12 = smov %s1479_s13 }
 0x162   : > { %s1850_s13 = smov %s1531_s19  ;;  %s1851_s14 = smov %s1522_s16 }
 0x163   :  { %12 = sbr.rel (!%p10_p9) target bundleno = 2 (0x2), region = 102 }

// kernel: simple_cnn_forward.5
= control target key start
LH: loop header
LB: loop body
LE: loop exit
PB: predicated region body
PF: predicated region fallthrough
CT: control target
= control target key end

     0   :  { %vm1752_vm0 = vmmov 0   ;;  %vm907_vm1 = vcmask 523264   ;;  %vm1313_vm2 = vcmask 80896   ;;  %s2158_s1 = inlined_call_operand.vmem [shape: bf16[1600,128], index: 1, kind: input, shape index: {}]   ;;  %s2159_s0 = inlined_call_operand.vmem [shape: bf16[16,1600], index: 0, kind: input, shape index: {}]   ;;  %s2160_s3 = inlined_call_operand.vmem [shape: bf16[128,10], index: 3, kind: input, shape index: {}]   ;;  %s2161_s2 = inlined_call_operand.vmem [shape: f32[1,128], index: 2, kind: input, shape index: {}]   ;;  %s2162_s4 = inlined_call_operand.vmem [shape: f32[1,10], index: 4, kind: input, shape index: {}]   ;;  %s2163_s5 = inlined_call_operand.vmem [shape: f32[16,10], index: 5, kind: output, shape index: {}]  }
   0x1   :  { %v1624_v0 = vld [vmem:[%s2158_s1 + $0x78] sm:$0xff]   ;;  %v1628_v4 = vld [vmem:[%s2158_s1 + $0x70] sm:$0xff]   ;;  %v1632_v8 = vld [vmem:[%s2158_s1 + $0x68] sm:$0xff]  }
   0x2   :  { %v1625_v1 = vld [vmem:[%s2158_s1 + $0x38] sm:$0xff]   ;;  %1444 = vmatprep.subr.bf16.mxu0 %v1624_v0  ;;  %v1629_v5 = vld [vmem:[%s2158_s1 + $0x30] sm:$0xff]   ;;  %v1633_v9 = vld [vmem:[%s2158_s1 + $0x28] sm:$0xff]  }
   0x3   :  { %v1626_v2 = vld [vmem:[%s2158_s1 + $0xf8] sm:$0xff]   ;;  %1445 = vmatpush3.bf16.msra.mxu0 %v1625_v1  ;;  %v1630_v6 = vld [vmem:[%s2158_s1 + $0xf0] sm:$0xff]   ;;  %v1634_v10 = vld [vmem:[%s2158_s1 + $0xe8] sm:$0xff]  }
   0x4   :  { %v1627_v3 = vld [vmem:[%s2158_s1 + $0xb8] sm:$0xff]   ;;  %1466 = vmatprep.subr.bf16.mxu1 %v1626_v2  ;;  %1446 = vmatprep.subr.bf16.mxu0 %v1628_v4  ;;  %v1631_v7 = vld [vmem:[%s2158_s1 + $0xb0] sm:$0xff]   ;;  %v1635_v11 = vld [vmem:[%s2158_s1 + $0xa8] sm:$0xff]  }
   0x5   :  { %1467 = vmatpush3.bf16.msra.mxu1 %v1627_v3  ;;  %v1636_v12 = vld [vmem:[%s2158_s1 + $0x60] sm:$0xff]   ;;  %v1640_v16 = vld [vmem:[%s2158_s1 + $0x58] sm:$0xff]   ;;  %v1644_v20 = vld [vmem:[%s2158_s1 + $0x50] sm:$0xff]  }
   0x6   :  { %1468 = vmatprep.subr.bf16.mxu1 %v1630_v6  ;;  %v1637_v13 = vld [vmem:[%s2158_s1 + $0x20] sm:$0xff]   ;;  %v1641_v17 = vld [vmem:[%s2158_s1 + $0x18] sm:$0xff]   ;;  %v1645_v21 = vld [vmem:[%s2158_s1 + $0x10] sm:$0xff]  }
   0x7   :  { %1447 = vmatpush3.bf16.msra.mxu0 %v1629_v5  ;;  %v1638_v14 = vld [vmem:[%s2158_s1 + $0xe0] sm:$0xff]   ;;  %v1642_v18 = vld [vmem:[%s2158_s1 + $0xd8] sm:$0xff]   ;;  %v1646_v22 = vld [vmem:[%s2158_s1 + $0xd0] sm:$0xff]  }
   0x8   :  { %1448 = vmatprep.subr.bf16.mxu0 %v1632_v8  ;;  %v1639_v15 = vld [vmem:[%s2158_s1 + $0xa0] sm:$0xff]   ;;  %v1643_v19 = vld [vmem:[%s2158_s1 + $0x98] sm:$0xff]   ;;  %v1647_v23 = vld [vmem:[%s2158_s1 + $0x90] sm:$0xff]  }
   0x9   :  { %1469 = vmatpush3.bf16.msra.mxu1 %v1631_v7  ;;  %v1648_v24 = vld [vmem:[%s2158_s1 + $0x48] sm:$0xff]   ;;  %v1652_v28 = vld [vmem:[%s2158_s1 + $0x40] sm:$0xff]   ;;  %v1659_v34 = vld [vmem:[%s2158_s1 + $0x178] sm:$0xff]  }
   0xa   :  { %1470 = vmatprep.subr.bf16.mxu1 %v1634_v10  ;;  %v1649_v25 = vld [vmem:[%s2158_s1 + $0x8] sm:$0xff]   ;;  %v1653_v29 = vld [vmem:[%s2158_s1] sm:$0xff]   ;;  %v1663_v37 = vld [vmem:[%s2158_s1 + $0x138] sm:$0xff]  }
   0xb   :  { %1449 = vmatpush3.bf16.msra.mxu0 %v1633_v9  ;;  %v1650_v26 = vld [vmem:[%s2158_s1 + $0xc8] sm:$0xff]   ;;  %v1654_v30 = vld [vmem:[%s2158_s1 + $0xc0] sm:$0xff]   ;;  %v1664_v38 = vld [vmem:[%s2158_s1 + $0x1f8] sm:$0xff]  }
   0xc   :  { %1450 = vmatprep.subr.bf16.mxu0 %v1636_v12  ;;  %v1651_v27 = vld [vmem:[%s2158_s1 + $0x88] sm:$0xff]   ;;  %v1655_v31 = vld [vmem:[%s2159_s0] ss:$52 sps:$4 sm:$0xff]   ;;  %v1657_v32 = vld [vmem:[%s2159_s0 + $0x4] ss:$52 sps:$4 sm:$0xff]  }
   0xd   :  { %1471 = vmatpush3.bf16.msra.mxu1 %v1635_v11  ;;  %v1658_v33 = vld [vmem:[%s2158_s1 + $0x80] sm:$0xff]   ;;  %943 = vmatprep.mubr.bf16.mxu0 %v1657_v32  ;;  %v1660_v35 = vld [vmem:[%s2159_s0 + $0x8] ss:$52 sps:$4 sm:$0xff]   ;;  %v1666_v40 = vld [vmem:[%s2158_s1 + $0x170] sm:$0xff]  }
   0xe   :  { %1472 = vmatprep.subr.bf16.mxu1 %v1638_v14  ;;  %v1662_v36 = vld [vmem:[%s2159_s0 + $0xc] ss:$52 sps:$4 sm:$0xff]   ;;  %v1665_v39 = vld [vmem:[%s2158_s1 + $0x1b8] sm:$0xff]   ;;  %v1667_v41 = vld [vmem:[%s2158_s1 + $0x130] sm:$0xff]  }
   0xf   :  { %1451 = vmatpush3.bf16.msra.mxu0 %v1637_v13  ;;  %984 = vmatprep.mubr.bf16.mxu1 %v1662_v36  ;;  %v1668_v42 = vld [vmem:[%s2158_s1 + $0x1f0] sm:$0xff]   ;;  %v1670_v44 = vld [vmem:[%s2158_s1 + $0x168] sm:$0xff]   ;;  %v1674_v48 = vld [vmem:[%s2158_s1 + $0x160] sm:$0xff]  }
  0x10   :  { %1452 = vmatprep.subr.bf16.mxu0 %v1640_v16  ;;  %v1669_v43 = vld [vmem:[%s2158_s1 + $0x1b0] sm:$0xff]   ;;  %v1671_v45 = vld [vmem:[%s2158_s1 + $0x128] sm:$0xff]   ;;  %v1675_v49 = vld [vmem:[%s2158_s1 + $0x120] sm:$0xff]  }
  0x11   :  { %1473 = vmatpush3.bf16.msra.mxu1 %v1639_v15  ;;  %v1672_v46 = vld [vmem:[%s2158_s1 + $0x1e8] sm:$0xff]   ;;  %v1676_v50 = vld [vmem:[%s2158_s1 + $0x1e0] sm:$0xff]   ;;  %v1678_v52 = vld [vmem:[%s2158_s1 + $0x158] sm:$0xff]  }
  0x12   :  { %1474 = vmatprep.subr.bf16.mxu1 %v1642_v18  ;;  %v1673_v47 = vld [vmem:[%s2158_s1 + $0x1a8] sm:$0xff]   ;;  %v1677_v51 = vld [vmem:[%s2158_s1 + $0x1a0] sm:$0xff]   ;;  %v1679_v53 = vld [vmem:[%s2158_s1 + $0x118] sm:$0xff]  }
  0x13   :  { %1453 = vmatpush3.bf16.msra.mxu0 %v1641_v17  ;;  %v1680_v54 = vld [vmem:[%s2158_s1 + $0x1d8] sm:$0xff]   ;;  %v1682_v56 = vld [vmem:[%s2158_s1 + $0x150] sm:$0xff]   ;;  %v1686_v60 = vld [vmem:[%s2158_s1 + $0x148] sm:$0xff]  }
  0x14   :  { %1454 = vmatprep.subr.bf16.mxu0 %v1644_v20  ;;  %v1681_v55 = vld [vmem:[%s2158_s1 + $0x198] sm:$0xff]   ;;  %v1683_v57 = vld [vmem:[%s2158_s1 + $0x110] sm:$0xff]   ;;  %v1687_v61 = vld [vmem:[%s2158_s1 + $0x108] sm:$0xff]  }
  0x15   :  { %1475 = vmatpush3.bf16.msra.mxu1 %v1643_v19  ;;  %v1684_v58 = vld [vmem:[%s2158_s1 + $0x1d0] sm:$0xff]   ;;  %v1688_v62 = vld [vmem:[%s2158_s1 + $0x1c8] sm:$0xff]   ;;  %v1690_v0 = vld [vmem:[%s2158_s1 + $0x140] sm:$0xff]  }
  0x16   :  { %1476 = vmatprep.subr.bf16.mxu1 %v1646_v22  ;;  %v1685_v59 = vld [vmem:[%s2158_s1 + $0x190] sm:$0xff]   ;;  %v1689_v63 = vld [vmem:[%s2158_s1 + $0x188] sm:$0xff]   ;;  %v1691_v1 = vld [vmem:[%s2158_s1 + $0x100] sm:$0xff]  }
  0x17   :  { %1455 = vmatpush3.bf16.msra.mxu0 %v1645_v21  ;;  %v1692_v2 = vld [vmem:[%s2158_s1 + $0x1c0] sm:$0xff]   ;;  %v1695_v4 = vld [vmem:[%s2159_s0 + $0x14] ss:$52 sps:$4 sm:$0xff]   ;;  %v1697_v6 = vld [vmem:[%s2158_s1 + $0x278] sm:$0xff]  }
  0x18   :  { %1456 = vmatprep.subr.bf16.mxu0 %v1648_v24  ;;  %v1693_v3 = vld [vmem:[%s2159_s0 + $0x10] ss:$52 sps:$4 sm:$0xff]   ;;  %v1698_v7 = vld [vmem:[%s2159_s0 + $0x18] ss:$52 sps:$4 sm:$0xff]  }
  0x19   :  { %1477 = vmatpush3.bf16.msra.mxu1 %v1647_v23  ;;  %v1696_v5 = vld [vmem:[%s2158_s1 + $0x180] sm:$0xff]   ;;  %v1700_v8 = vld [vmem:[%s2159_s0 + $0x1c] ss:$52 sps:$4 sm:$0xff]   ;;  %v1708_v16 = vld [vmem:[%s2158_s1 + $0x268] sm:$0xff]  }
  0x1a   :  { %1478 = vmatprep.subr.bf16.mxu1 %v1650_v26  ;;  %v1701_v9 = vld [vmem:[%s2158_s1 + $0x238] sm:$0xff]   ;;  %v1704_v12 = vld [vmem:[%s2158_s1 + $0x270] sm:$0xff]   ;;  %v1709_v17 = vld [vmem:[%s2158_s1 + $0x228] sm:$0xff]  }
  0x1b   :  { %1457 = vmatpush3.bf16.msra.mxu0 %v1649_v25  ;;  %v1702_v10 = vld [vmem:[%s2158_s1 + $0x2f8] sm:$0xff]   ;;  %v1705_v13 = vld [vmem:[%s2158_s1 + $0x230] sm:$0xff]   ;;  %v1710_v18 = vld [vmem:[%s2158_s1 + $0x2e8] sm:$0xff]  }
  0x1c   :  { %1458 = vmatprep.subr.bf16.mxu0 %v1652_v28  ;;  %v1703_v11 = vld [vmem:[%s2158_s1 + $0x2b8] sm:$0xff]   ;;  %v1706_v14 = vld [vmem:[%s2158_s1 + $0x2f0] sm:$0xff]   ;;  %v1711_v19 = vld [vmem:[%s2158_s1 + $0x2a8] sm:$0xff]  }
  0x1d   :  { %1479 = vmatpush3.bf16.msra.mxu1 %v1651_v27  ;;  %v1707_v15 = vld [vmem:[%s2158_s1 + $0x2b0] sm:$0xff]   ;;  %v1712_v20 = vld [vmem:[%s2158_s1 + $0x260] sm:$0xff]   ;;  %v1716_v24 = vld [vmem:[%s2158_s1 + $0x258] sm:$0xff]  }
  0x1e   :  { %1480 = vmatprep.subr.bf16.mxu1 %v1654_v30  ;;  %v1713_v21 = vld [vmem:[%s2158_s1 + $0x220] sm:$0xff]   ;;  %v1717_v25 = vld [vmem:[%s2158_s1 + $0x218] sm:$0xff]   ;;  %v1720_v28 = vld [vmem:[%s2158_s1 + $0x250] sm:$0xff]  }
  0x1f   :  { %1459 = vmatpush3.bf16.msra.mxu0 %v1653_v29  ;;  %v1714_v22 = vld [vmem:[%s2158_s1 + $0x2e0] sm:$0xff]   ;;  %v1718_v26 = vld [vmem:[%s2158_s1 + $0x2d8] sm:$0xff]   ;;  %v1721_v29 = vld [vmem:[%s2158_s1 + $0x210] sm:$0xff]  }
  0x20   :  { %1488 = vmatprep.subr.bf16.mxu0 %v1659_v34  ;;  %v1715_v23 = vld [vmem:[%s2158_s1 + $0x2a0] sm:$0xff]   ;;  %v1719_v27 = vld [vmem:[%s2158_s1 + $0x298] sm:$0xff]   ;;  %v1722_v30 = vld [vmem:[%s2158_s1 + $0x2d0] sm:$0xff]  }
  0x21   :  { %1481 = vmatpush3.bf16.msra.mxu1 %v1658_v33  ;;  %v1724_v32 = vld [vmem:[%s2158_s1 + $0x248] sm:$0xff]   ;;  %v1728_v36 = vld [vmem:[%s2158_s1 + $0x240] sm:$0xff]  }
  0x22   :  { %944 = vmatmul.mubr.bf16.vlgmr.msra.gmra.mxu0 %v1655_v31  ;;  %1510 = vmatprep.subr.bf16.mxu1 %v1664_v38  ;;  %v1723_v31 = vld [vmem:[%s2158_s1 + $0x290] sm:$0xff]   ;;  %v1725_v33 = vld [vmem:[%s2158_s1 + $0x208] sm:$0xff]   ;;  %v1730_v38 = vld [vmem:[%s2158_s1 + $0x2c0] sm:$0xff]  }
  0x23   :  { %1489 = vmatpush3.bf16.msra.mxu0 %v1663_v37  ;;  %1025 = vmatprep.mubr.bf16.mxu0 %v1695_v4  ;;  %v1726_v34 = vld [vmem:[%s2158_s1 + $0x2c8] sm:$0xff]   ;;  %v1729_v37 = vld [vmem:[%s2158_s1 + $0x200] sm:$0xff]  }
  0x24   :  { %985 = vmatmul.mubr.bf16.vlgmr.msra.gmra.mxu1 %v1660_v35  ;;  %1490 = vmatprep.subr.bf16.mxu0 %v1666_v40  ;;  %v1727_v35 = vld [vmem:[%s2158_s1 + $0x288] sm:$0xff]   ;;  %v1733_v40 = vld [vmem:[%s2159_s0 + $0x24] ss:$52 sps:$4 sm:$0xff]  }
  0x25   :  { %1511 = vmatpush3.bf16.msra.mxu1 %v1665_v39  ;;  %1066 = vmatprep.mubr.bf16.mxu1 %v1700_v8  ;;  %v1731_v39 = vld [vmem:[%s2159_s0 + $0x20] ss:$52 sps:$4 sm:$0xff]  }
  0x26   :  { %1512 = vmatprep.subr.bf16.mxu1 %v1668_v42  ;;  %v1751_v42 = vmov 0.0  }
  0x27   :  { %1491 = vmatpush3.bf16.msra.mxu0 %v1667_v41  ;;  %v1734_v41 = vld [vmem:[%s2158_s1 + $0x280] sm:$0xff]  }
  0x28   :  { %1492 = vmatprep.subr.bf16.mxu0 %v1670_v44  ;;  %v1737_v44 = vld [vmem:[%s2159_s0 + $0x2c] ss:$52 sps:$4 sm:$0xff]  }
  0x29   :  { %1513 = vmatpush3.bf16.msra.mxu1 %v1669_v43  ;;  %v1735_v43 = vld [vmem:[%s2159_s0 + $0x28] ss:$52 sps:$4 sm:$0xff]  }
  0x2a   :  { %1514 = vmatprep.subr.bf16.mxu1 %v1672_v46  ;;  %v1739_v46 = vld [vmem:[%s2158_s1 + $0x310] sm:$0xff]  }
  0x2b   :  { %1493 = vmatpush3.bf16.msra.mxu0 %v1671_v45  ;;  %v1738_v45 = vld [vmem:[%s2158_s1 + $0x318] sm:$0xff]  }
  0x2c   :  { %1494 = vmatprep.subr.bf16.mxu0 %v1674_v48  ;;  %v1741_v48 = vld [vmem:[%s2158_s1 + $0x300] sm:$0xff]  }
  0x2d   :  { %1515 = vmatpush3.bf16.msra.mxu1 %v1673_v47  ;;  %v1740_v47 = vld [vmem:[%s2158_s1 + $0x308] sm:$0xff]  }
  0x2e   :  { %1516 = vmatprep.subr.bf16.mxu1 %v1676_v50  ;;  %v1743_v50 = vld [vmem:[%s2160_s3 + $0x38] sm:$0xff]  }
  0x2f   :  { %1495 = vmatpush3.bf16.msra.mxu0 %v1675_v49  ;;  %v1742_v49 = vld [vmem:[%s2159_s0 + $0x30] ss:$52 sps:$4 sm:$0xff]  }
  0x30   :  { %1496 = vmatprep.subr.bf16.mxu0 %v1678_v52  ;;  %v1745_v52 = vld [vmem:[%s2160_s3 + $0x28] sm:$0xff]  }
  0x31   :  { %1517 = vmatpush3.bf16.msra.mxu1 %v1677_v51  ;;  %v1744_v51 = vld [vmem:[%s2160_s3 + $0x30] sm:$0xff]  }
  0x32   :  { %1518 = vmatprep.subr.bf16.mxu1 %v1680_v54  ;;  %v1747_v54 = vld [vmem:[%s2160_s3 + $0x18] sm:$0xff]  }
  0x33   :  { %1497 = vmatpush3.bf16.msra.mxu0 %v1679_v53  ;;  %v1746_v53 = vld [vmem:[%s2160_s3 + $0x20] sm:$0xff]  }
  0x34   :  { %1498 = vmatprep.subr.bf16.mxu0 %v1682_v56  ;;  %v1749_v56 = vld [vmem:[%s2160_s3 + $0x8] sm:$0xff]  }
  0x35   :  { %1519 = vmatpush3.bf16.msra.mxu1 %v1681_v55  ;;  %v1748_v55 = vld [vmem:[%s2160_s3 + $0x10] sm:$0xff]  }
  0x36   :  { %1520 = vmatprep.subr.bf16.mxu1 %v1684_v58 }
  0x37   :  { %1499 = vmatpush3.bf16.msra.mxu0 %v1683_v57  ;;  %v1750_v57 = vld [vmem:[%s2160_s3] sm:$0xff]  }
  0x38   :  { %1500 = vmatprep.subr.bf16.mxu0 %v1686_v60 }
  0x39   :  { %1521 = vmatpush3.bf16.msra.mxu1 %v1685_v59 }
  0x3a   :  { %1522 = vmatprep.subr.bf16.mxu1 %v1688_v62 }
  0x3b   :  { %1501 = vmatpush3.bf16.msra.mxu0 %v1687_v61 }
  0x3c   :  { %1502 = vmatprep.subr.bf16.mxu0 %v1690_v0 }
  0x3d   :  { %1523 = vmatpush3.bf16.msra.mxu1 %v1689_v63 }
  0x3e   :  { %1524 = vmatprep.subr.bf16.mxu1 %v1692_v2 }
  0x3f   :  { %1503 = vmatpush3.bf16.msra.mxu0 %v1691_v1 }
  0x40   :  { %1532 = vmatprep.subr.bf16.mxu0 %v1697_v6 }
  0x41   :  { %1525 = vmatpush3.bf16.msra.mxu1 %v1696_v5 }
  0x42   :  { %1026 = vmatmul.mubr.bf16.vlgmr.msra.gmra.mxu0 %v1693_v3  ;;  %1554 = vmatprep.subr.bf16.mxu1 %v1702_v10  ;;  %v1320_v10 = vld [vmem:[%s2161_s2] ss:$0 sm:$0xff] }
  0x43   :  { %1533 = vmatpush3.bf16.msra.mxu0 %v1701_v9  ;;  %1107 = vmatprep.mubr.bf16.mxu0 %v1733_v40 }
  0x44   :  { %1067 = vmatmul.mubr.bf16.vlgmr.msra.gmra.mxu1 %v1698_v7  ;;  %1534 = vmatprep.subr.bf16.mxu0 %v1704_v12 }
  0x45   :  { %1555 = vmatpush3.bf16.msra.mxu1 %v1703_v11  ;;  %1148 = vmatprep.mubr.bf16.mxu1 %v1737_v44 }
  0x46   :  { %1556 = vmatprep.subr.bf16.mxu1 %v1706_v14 }
  0x47   :  { %1535 = vmatpush3.bf16.msra.mxu0 %v1705_v13 }
  0x48   :  { %1536 = vmatprep.subr.bf16.mxu0 %v1708_v16 }
  0x49   :  { %1557 = vmatpush3.bf16.msra.mxu1 %v1707_v15 }
  0x4a   :  { %1558 = vmatprep.subr.bf16.mxu1 %v1710_v18 }
  0x4b   :  { %1537 = vmatpush3.bf16.msra.mxu0 %v1709_v17 }
  0x4c   :  { %1538 = vmatprep.subr.bf16.mxu0 %v1712_v20 }
  0x4d   :  { %1559 = vmatpush3.bf16.msra.mxu1 %v1711_v19 }
  0x4e   :  { %1560 = vmatprep.subr.bf16.mxu1 %v1714_v22 }
  0x4f   :  { %1539 = vmatpush3.bf16.msra.mxu0 %v1713_v21 }
  0x50   :  { %1540 = vmatprep.subr.bf16.mxu0 %v1716_v24 }
  0x51   :  { %1561 = vmatpush3.bf16.msra.mxu1 %v1715_v23 }
  0x52   :  { %1562 = vmatprep.subr.bf16.mxu1 %v1718_v26 }
  0x53   :  { %1541 = vmatpush3.bf16.msra.mxu0 %v1717_v25 }
  0x54   :  { %1542 = vmatprep.subr.bf16.mxu0 %v1720_v28 }
  0x55   :  { %1563 = vmatpush3.bf16.msra.mxu1 %v1719_v27 }
  0x56   :  { %1564 = vmatprep.subr.bf16.mxu1 %v1722_v30 }
  0x57   :  { %1543 = vmatpush3.bf16.msra.mxu0 %v1721_v29 }
  0x58   :  { %1544 = vmatprep.subr.bf16.mxu0 %v1724_v32 }
  0x59   :  { %1565 = vmatpush3.bf16.msra.mxu1 %v1723_v31 }
  0x5a   :  { %1566 = vmatprep.subr.bf16.mxu1 %v1726_v34 }
  0x5b   :  { %1545 = vmatpush3.bf16.msra.mxu0 %v1725_v33 }
  0x5c   :  { %1546 = vmatprep.subr.bf16.mxu0 %v1728_v36 }
  0x5d   :  { %1567 = vmatpush3.bf16.msra.mxu1 %v1727_v35 }
  0x5e   :  { %1568 = vmatprep.subr.bf16.mxu1 %v1730_v38 }
  0x5f   :  { %1547 = vmatpush3.bf16.msra.mxu0 %v1729_v37 }
  0x60   :  { %1590 = vmatprep.subr.bf16.mxu0 %v1751_v42 }
  0x61   :  { %1569 = vmatpush3.bf16.msra.mxu1 %v1734_v41 }
  0x62   :  { %1108 = vmatmul.mubr.bf16.vlgmr.msra.gmra.mxu0 %v1731_v39  ;;  %1602 = vmatprep.subr.bf16.mxu1 %v1751_v42 }
  0x63   :  { %1598 = vmatprep.mubr.msk.bf16.mxu0 %vm1752_vm0, %v1751_v42  ;;  %1591 = vmatpush3.bf16.msra.mxu0 %v1738_v45 }
  0x64   :  { %1149 = vmatmul.mubr.bf16.vlgmr.msra.gmra.mxu1 %v1735_v43  ;;  %1592 = vmatprep.subr.bf16.mxu0 %v1751_v42 }
  0x65   :  { %1618 = vmatprep.mubr.msk.bf16.mxu1 %vm1752_vm0, %v1751_v42  ;;  %1603 = vmatpush3.bf16.msra.mxu1 %v1743_v50 }
  0x66   :  { %1604 = vmatprep.subr.bf16.mxu1 %v1751_v42 }
  0x67   :  { %1593 = vmatpush3.bf16.msra.mxu0 %v1739_v46 }
  0x68   :  { %1594 = vmatprep.subr.bf16.mxu0 %v1751_v42 }
  0x69   :  { %1605 = vmatpush3.bf16.msra.mxu1 %v1744_v51 }
  0x6a   :  { %1606 = vmatprep.subr.bf16.mxu1 %v1751_v42 }
  0x6b   :  { %1595 = vmatpush3.bf16.msra.mxu0 %v1740_v47 }
  0x6c   :  { %1596 = vmatprep.subr.bf16.mxu0 %v1751_v42 }
  0x6d   :  { %1607 = vmatpush3.bf16.msra.mxu1 %v1745_v52  ;;  %v1435_v52 = vld [vmem:[%s2162_s4] ss:$0 sm:$0xff] }
  0x6e   :  { %1608 = vmatprep.subr.bf16.mxu1 %v1751_v42 }
  0x6f   :  { %1597 = vmatpush3.bf16.msra.mxu0 %v1741_v48 }
  0x71   :  { %1609 = vmatpush3.bf16.msra.mxu1 %v1746_v53 }
  0x72   :  { %1599 = vmatmul.mubr.msk.bf16.vlgmr.msra.gmra.mxu0 %vm907_vm1, %v1742_v49  ;;  %1610 = vmatprep.subr.bf16.mxu1 %v1751_v42 }
  0x75   :  { %1611 = vmatpush3.bf16.msra.mxu1 %v1747_v54 }
  0x76   :  { %1612 = vmatprep.subr.bf16.mxu1 %v1751_v42 }
  0x79   :  { %1613 = vmatpush3.bf16.msra.mxu1 %v1748_v55 }
  0x7a   :  { %1614 = vmatprep.subr.bf16.mxu1 %v1751_v42 }
  0x7d   :  { %1615 = vmatpush3.bf16.msra.mxu1 %v1749_v56 }
  0x7e   :  { %1616 = vmatprep.subr.bf16.mxu1 %v1751_v42 }
  0x81   :  { %1617 = vmatpush3.bf16.msra.mxu1 %v1750_v57 }
  0xe2   :  { %v1460_v58 = vpop.f32.mrf.mxu0 }
  0xe4   :  { %v1482_v59 = vpop.f32.mrf.mxu1  ;;  %v1461_v60 = vpop.f32.mrf.mxu0 }
  0xe5   :  { %v1462_v8 = vadd.f32 %v1461_v60, %v1460_v58 }
  0xe6   :  { %v1483_v61 = vpop.f32.mrf.mxu1  ;;  %v1463_v62 = vpop.f32.mrf.mxu0 }
  0xe7   :  { %v946_v14 = vadd.f32 %v1462_v8, %v1320_v10  ;;  %v1484_v15 = vadd.f32 %v1483_v61, %v1482_v59 }
  0xe8   :  { %v1485_v63 = vpop.f32.mrf.mxu1  ;;  %v1464_v0 = vpop.f32.mrf.mxu0 }
  0xe9   :  { %v1465_v11 = vadd.f32 %v1464_v0, %v1463_v62  ;;  %v987_v23 = vadd.f32 %v1484_v15, %v946_v14 }
  0xea   :  { %v1486_v2 = vpop.f32.mrf.mxu1 }
  0xeb   :  { %v949_v18 = vadd.f32 %v1465_v11, %v1320_v10  ;;  %v1487_v19 = vadd.f32 %v1486_v2, %v1485_v63 }
  0xed   :  { %v990_v25 = vadd.f32 %v1487_v19, %v949_v18 }
 0x102   :  { %v1504_v1 = vpop.f32.mrf.mxu0 }
 0x104   :  { %v1526_v3 = vpop.f32.mrf.mxu1  ;;  %v1505_v4 = vpop.f32.mrf.mxu0 }
 0x105   :  { %v1506_v20 = vadd.f32 %v1505_v4, %v1504_v1 }
 0x106   :  { %v1527_v5 = vpop.f32.mrf.mxu1  ;;  %v1507_v6 = vpop.f32.mrf.mxu0 }
 0x107   :  { %v1028_v26 = vadd.f32 %v1506_v20, %v987_v23  ;;  %v1528_v27 = vadd.f32 %v1527_v5, %v1526_v3 }
 0x108   :  { %v1529_v7 = vpop.f32.mrf.mxu1  ;;  %v1508_v9 = vpop.f32.mrf.mxu0 }
 0x109   :  { %v1509_v24 = vadd.f32 %v1508_v9, %v1507_v6  ;;  %v1069_v33 = vadd.f32 %v1528_v27, %v1028_v26 }
 0x10a   :  { %v1530_v13 = vpop.f32.mrf.mxu1 }
 0x10b   :  { %v1031_v30 = vadd.f32 %v1509_v24, %v990_v25  ;;  %v1531_v31 = vadd.f32 %v1530_v13, %v1529_v7 }
 0x10d   :  { %v1072_v36 = vadd.f32 %v1531_v31, %v1031_v30 }
 0x122   :  { %v1548_v12 = vpop.f32.mrf.mxu0 }
 0x124   :  { %v1549_v16 = vpop.f32.mrf.mxu0  ;;  %v1570_v17 = vpop.f32.mrf.mxu1 }
 0x125   :  { %v1550_v32 = vadd.f32 %v1549_v16, %v1548_v12 }
 0x126   :  { %v1551_v21 = vpop.f32.mrf.mxu0  ;;  %v1571_v22 = vpop.f32.mrf.mxu1 }
 0x127   :  { %v1110_v37 = vadd.f32 %v1550_v32, %v1069_v33  ;;  %v1572_v38 = vadd.f32 %v1571_v22, %v1570_v17 }
 0x128   :  { %v1552_v28 = vpop.f32.mrf.mxu0  ;;  %v1573_v29 = vpop.f32.mrf.mxu1 }
 0x129   :  { %v1553_v34 = vadd.f32 %v1552_v28, %v1551_v21  ;;  %v1151_v42 = vadd.f32 %v1572_v38, %v1110_v37 }
 0x12a   :  { %v1574_v35 = vpop.f32.mrf.mxu1 }
 0x12b   :  { %v1113_v39 = vadd.f32 %v1553_v34, %v1072_v36  ;;  %v1575_v40 = vadd.f32 %v1574_v35, %v1573_v29 }
 0x12d   :  { %v1154_v45 = vadd.f32 %v1575_v40, %v1113_v39 }
 0x132   :  { %v1191_v41 = vpop.f32.mrf.mxu0 }
 0x133   :  { %v1192_v44 = vadd.f32 %v1191_v41, %v1151_v42 }
 0x134   :  { %v1600_v43 = vpop.f32.mrf.mxu0 }
 0x135   :  { %v1198_v49 = vmax.f32 %v1192_v44, 0.0 }
 0x136   :  { %v1194_v46 = vpop.f32.mrf.mxu0 }
 0x137   :  { %v1195_v47 = vadd.f32 %v1194_v46, %v1154_v45 }
 0x138   :  { %v1601_v48 = vpop.f32.mrf.mxu0 }
 0x139   :  { %v1199_v50 = vmax.f32 %v1195_v47, 0.0 }
 0x13b   :  { %v1200_v51 = vpack.c.bf16 %v1199_v50, %v1198_v49 }
 0x13d   :  { %1619 = vmatmul.mubr.bf16.vlgmr.msra.gmra.mxu1 %v1200_v51 }
 0x1fd   :  { %v1306_v53 = vpop.f32.mrf.mxu1 }
 0x1fe   :  { %v1307_v54 = vadd.f32 %v1435_v52, %v1306_v53 }
 0x1ff   :  { %v1620_v55 = vpop.f32.mrf.mxu1 }
 0x200   :  { %1314 = vst.msk [vmem:[%s2163_s5] sm:$0xff] %vm1313_vm2, %v1307_v54 }
 0x201   :  { %v1309_v56 = vpop.f32.mrf.mxu1 }
 0x202   :  { %v1310_v57 = vadd.f32 %v1435_v52, %v1309_v56 }
 0x203   :  { %v1621_v58 = vpop.f32.mrf.mxu1 }
 0x204   :  { %1315 = vst.msk [vmem:[%s2163_s5 + $0x8] sm:$0xff] %vm1313_vm2, %v1310_v57 }

</bundles_post_ra>
